<compile_context>
chip_gen: v6e
topology: v6e:2x2x1
jax: 0.10.0
libtpu: 0.0.40
codegen_flags: <defaults>
</compile_context>

<pallas_src>
import functools

import jax
import jax.numpy as jnp
import numpy as np
from jax.experimental import pallas as pl
from jax.experimental.pallas import tpu as pltpu


def gru_net_kernel(x_ref, w_ref, b_ref,
                   out_ref, hid_ref,
                   gi0_scr, ys_scr,
                   *, seq_len, batch_pad, batch, hidden_size, in_dim, out_pad):
    S, Bp, B, H, Din, Op = seq_len, batch_pad, batch, hidden_size, in_dim, out_pad
    TH = 3 * H

    # ---- static, loop-invariant slices of the packed parameter slabs (hoisted) ----
    r1 = Din            # whh0 row offset
    r2 = Din + H        # wih1
    r3 = Din + 2 * H    # whh1
    r4 = Din + 3 * H    # wo

    wih0 = w_ref[0:r1, 0:TH]
    whh0 = w_ref[r1:r2, 0:TH]
    wih1 = w_ref[r2:r3, 0:TH]
    whh1 = w_ref[r3:r4, 0:TH]
    wo = w_ref[r4:r4 + H, 0:Op]

    bi0 = b_ref[0:1, 0:TH]       # folded b_ih+b_hh for r/z, b_ih for n (layer 0)
    bh0 = b_ref[1:2, 0:TH]       # b_hh_n only (layer 0)
    bi1 = b_ref[2:3, 0:TH]
    bh1 = b_ref[3:4, 0:TH]
    bo = b_ref[4:5, 0:Op]

    # ---- hoisted layer-0 input GEMM for ALL timesteps ----
    gi0_scr[...] = (
        jnp.dot(x_ref[...], wih0, preferred_element_type=jnp.float32) + bi0)

    def gru_gates(gi, gh, h):
        # gate layout [r | z | n] (PyTorch order); r/z biases already folded into gi.
        r = jax.nn.sigmoid(gi[:, :H] + gh[:, :H])
        z = jax.nn.sigmoid(gi[:, H:2 * H] + gh[:, H:2 * H])
        n = jnp.tanh(gi[:, 2 * H:] + r * gh[:, 2 * H:])
        return n + z * (h - n)      # == (1-z)*n + z*h

    def step(t, carry):
        h0, h1 = carry
        row = t * Bp
        gi0 = gi0_scr[pl.ds(row, Bp), :]
        gh0 = jnp.dot(h0, whh0, preferred_element_type=jnp.float32) + bh0
        h0n = gru_gates(gi0, gh0, h0)
        gi1 = jnp.dot(h0n, wih1, preferred_element_type=jnp.float32) + bi1
        gh1 = jnp.dot(h1, whh1, preferred_element_type=jnp.float32) + bh1
        h1n = gru_gates(gi1, gh1, h1)
        ys_scr[pl.ds(row, Bp), :] = h1n
        return h0n, h1n

    h_init = jnp.zeros((Bp, H), jnp.float32)        # PyTorch nn.GRU default zero hidden
    h0, h1 = jax.lax.fori_loop(0, S, step, (h_init, h_init), unroll=True)

    # final hidden (2, Bp, H), written once after the loop
    hid_ref[0] = h0
    hid_ref[1] = h1

    # ---- deferred i2o + Dropout(eval identity) + LogSoftmax(dim=1 == batch axis) ----
    logits = (jnp.dot(ys_scr[...], wo, preferred_element_type=jnp.float32)
              + bo)                                            # (S*Bp, Op), lane-dense
    logits = logits.reshape(S, Bp, Op)
    b_idx = jax.lax.broadcasted_iota(jnp.int32, logits.shape, 1)
    logits = jnp.where(b_idx < B, logits, jnp.float32(-1e30))  # mask padded batch rows
    m = jnp.max(logits, axis=1, keepdims=True)
    s = logits - m
    lse = jnp.log(jnp.sum(jnp.exp(s), axis=1, keepdims=True))
    out_ref[...] = s - lse


@jax.jit
def gru_net_forward(category, inputs, params):
    """category: (B, n_categories) f32, inputs: (S, B, input_size) f32."""
    S, B, _ = inputs.shape
    n_cat = category.shape[1]
    H = params["whh0"].shape[0]
    O = params["wo"].shape[1]
    TH = 3 * H

    Bp = ((B + 7) // 8) * 8                 # sublane pad
    Op = ((O + 127) // 128) * 128           # lane pad for the output projection
    lane_w = ((max(TH, Op) + 127) // 128) * 128

    # ---- combined input (category broadcast over time) ----
    cat = jnp.broadcast_to(category[None], (S, B, n_cat))
    combined = jnp.concatenate([cat, inputs], axis=2)          # (S, B, Din)
    combined = jnp.pad(combined, ((0, 0), (0, Bp - B), (0, 0)))
    Din = combined.shape[2]
    x = combined.reshape(S * Bp, Din)

    # ---- parameter prep: bias folding + single packed weight / bias slabs ----
    def fold_bias(bih, bhh):
        # r/z biases folded into the "gi" side; b_hh_n kept separate (needed inside r*gh_n).
        bi = jnp.concatenate([bih[:, :2 * H] + bhh[:, :2 * H], bih[:, 2 * H:]], axis=1)
        bh = jnp.concatenate([jnp.zeros((1, 2 * H), jnp.float32), bhh[:, 2 * H:]], axis=1)
        return bi, bh

    bi0, bh0 = fold_bias(params["bih0"], params["bhh0"])
    bi1, bh1 = fold_bias(params["bih1"], params["bhh1"])

    def padw(w):
        return jnp.pad(w, ((0, 0), (0, lane_w - w.shape[1])))

    w_pack = jnp.concatenate([
        padw(params["wih0"]),   # rows [0, Din)
        padw(params["whh0"]),   # rows [Din, Din+H)
        padw(params["wih1"]),   # rows [Din+H, Din+2H)
        padw(params["whh1"]),   # rows [Din+2H, Din+3H)
        padw(params["wo"]),     # rows [Din+3H, Din+4H)
    ], axis=0)
    rows = w_pack.shape[0]
    rows_p = ((rows + 7) // 8) * 8
    w_pack = jnp.pad(w_pack, ((0, rows_p - rows), (0, 0)))

    b_pack = jnp.concatenate(
        [padw(bi0), padw(bh0), padw(bi1), padw(bh1), padw(params["bo"])], axis=0)
    b_pack = jnp.pad(b_pack, ((0, 8 - b_pack.shape[0]), (0, 0)))   # (8, lane_w)

    kernel = functools.partial(gru_net_kernel, seq_len=S, batch_pad=Bp, batch=B,
                               hidden_size=H, in_dim=Din, out_pad=Op)

    grid_spec = pltpu.PrefetchScalarGridSpec(
        num_scalar_prefetch=0,
        grid=(1,),
        in_specs=[
            pl.BlockSpec((S * Bp, Din), lambda i: (0, 0)),         # combined input (flat)
            pl.BlockSpec(w_pack.shape, lambda i: (0, 0)),          # packed weights
            pl.BlockSpec(b_pack.shape, lambda i: (0, 0)),          # packed biases
        ],
        out_specs=[
            pl.BlockSpec((S, Bp, Op), lambda i: (0, 0, 0)),        # log-probs slab
            pl.BlockSpec((2, Bp, H), lambda i: (0, 0, 0)),         # final hidden
        ],
        scratch_shapes=[
            pltpu.VMEM((S * Bp, TH), jnp.float32),                 # hoisted layer-0 gi
            pltpu.VMEM((S * Bp, H), jnp.float32),                  # per-step top-layer h1
        ],
    )

    out_p, hid_p = pl.pallas_call(
        kernel,
        grid_spec=grid_spec,
        out_shape=(
            jax.ShapeDtypeStruct((S, Bp, Op), jnp.float32),
            jax.ShapeDtypeStruct((2, Bp, H), jnp.float32),
        ),
        compiler_params=pltpu.CompilerParams(dimension_semantics=("arbitrary",)),
    )(x, w_pack, b_pack)

    return out_p[:, :B, :O], hid_p[:, :B, :]


def reference_forward(category, inputs, p):
    """Pure-JAX reference reproducing the PyTorch forward semantics."""
    S, B, _ = inputs.shape
    H = p["whh0"].shape[0]
    cat = jnp.broadcast_to(category[None], (S, B, category.shape[1]))
    x = jnp.concatenate([cat, inputs], axis=2)

    def cell(x_t, h, wih, whh, bih, bhh):
        gi = x_t @ wih + bih
        gh = h @ whh + bhh
        r = jax.nn.sigmoid(gi[:, :H] + gh[:, :H])
        z = jax.nn.sigmoid(gi[:, H:2 * H] + gh[:, H:2 * H])
        n = jnp.tanh(gi[:, 2 * H:] + r * gh[:, 2 * H:])
        return (1.0 - z) * n + z * h

    def step(carry, x_t):
        h0, h1 = carry
        h0 = cell(x_t, h0, p["wih0"], p["whh0"], p["bih0"], p["bhh0"])
        h1 = cell(h0, h1, p["wih1"], p["whh1"], p["bih1"], p["bhh1"])
        return (h0, h1), h1

    init = (jnp.zeros((B, H), jnp.float32), jnp.zeros((B, H), jnp.float32))
    (h0, h1), ys = jax.lax.scan(step, init, x)
    logits = ys @ p["wo"] + p["bo"]
    out = jax.nn.log_softmax(logits, axis=1)     # dim=1 == batch axis, exactly as the module
    return out, jnp.stack([h0, h1])


def make_params(key, input_size, n_categories, hidden_size, output_size):
    Din = input_size + n_categories
    H = hidden_size
    k = 1.0 / np.sqrt(H)
    keys = jax.random.split(key, 10)

    def u(kk, shape):
        return jax.random.uniform(kk, shape, jnp.float32, -k, k)

    # Weights stored pre-transposed so the kernel can do x @ W directly.
    return {
        "wih0": u(keys[0], (Din, 3 * H)),
        "whh0": u(keys[1], (H, 3 * H)),
        "bih0": u(keys[2], (1, 3 * H)),
        "bhh0": u(keys[3], (1, 3 * H)),
        "wih1": u(keys[4], (H, 3 * H)),
        "whh1": u(keys[5], (H, 3 * H)),
        "bih1": u(keys[6], (1, 3 * H)),
        "bhh1": u(keys[7], (1, 3 * H)),
        "wo": u(keys[8], (H, output_size)),
        "bo": u(keys[9], (1, output_size)),
    }


if __name__ == "__main__":
    input_size, n_categories, hidden_size, output_size = 16, 8, 32, 20
    seq_len, batch = 8, 4

    key = jax.random.PRNGKey(0)
    k_par, k_cat, k_in = jax.random.split(key, 3)

    params = make_params(k_par, input_size, n_categories, hidden_size, output_size)
    category = jax.random.normal(k_cat, (batch, n_categories), jnp.float32)
    inputs = jax.random.normal(k_in, (seq_len, batch, input_size), jnp.float32)

    out, hidden = gru_net_forward(category, inputs, params)
    out, hidden = jax.block_until_ready((out, hidden))

    ref_out, ref_hidden = reference_forward(category, inputs, params)
    assert out.shape == (seq_len, batch, output_size)
    assert hidden.shape == (2, batch, hidden_size)
    np.testing.assert_allclose(np.asarray(out), np.asarray(ref_out), atol=5e-5, rtol=5e-5)
    np.testing.assert_allclose(np.asarray(hidden), np.asarray(ref_hidden), atol=5e-5, rtol=5e-5)

    print("KERNEL_OK")
</pallas_src>

<mosaic_0001>
module attributes {stable_mosaic.version = 11 : i64} {
  func.func @gru_net_kernel(%arg0: i32, %arg1: memref<64x24xf32, #tpu.memory_space<vmem>>, %arg2: memref<152x128xf32, #tpu.memory_space<vmem>>, %arg3: memref<8x128xf32, #tpu.memory_space<vmem>>, %arg4: memref<8x8x128xf32, #tpu.memory_space<vmem>>, %arg5: memref<2x8x32xf32, #tpu.memory_space<vmem>>, %arg6: memref<64x96xf32, #tpu.memory_space<vmem>>, %arg7: memref<64x32xf32, #tpu.memory_space<vmem>>) attributes {dimension_semantics = [#tpu.dimension_semantics<arbitrary>], iteration_bounds = array<i64: 1>, scalar_prefetch = 0 : i64, scratch_operands = 2 : i64, tpu.core_type = #tpu.core_type<tc>, window_params = [{pipeline_mode = #tpu.pipeline_mode<synchronous>, transform_indices = @transform_0, window_bounds = array<i64: 64, 24>}, {pipeline_mode = #tpu.pipeline_mode<synchronous>, transform_indices = @transform_1, window_bounds = array<i64: 152, 128>}, {pipeline_mode = #tpu.pipeline_mode<synchronous>, transform_indices = @transform_2, window_bounds = array<i64: 8, 128>}, {pipeline_mode = #tpu.pipeline_mode<synchronous>, transform_indices = @transform_3, window_bounds = array<i64: 8, 8, 128>}, {pipeline_mode = #tpu.pipeline_mode<synchronous>, transform_indices = @transform_4, window_bounds = array<i64: 2, 8, 32>}]} {
    %c0 = arith.constant 0 : index
    %c0_0 = arith.constant 0 : index
    %0 = vector.load %arg2[%c0, %c0_0] : memref<152x128xf32, #tpu.memory_space<vmem>>, vector<24x96xf32>
    %c24 = arith.constant 24 : index
    %c0_1 = arith.constant 0 : index
    %1 = vector.load %arg2[%c24, %c0_1] : memref<152x128xf32, #tpu.memory_space<vmem>>, vector<32x96xf32>
    %c56 = arith.constant 56 : index
    %c0_2 = arith.constant 0 : index
    %2 = vector.load %arg2[%c56, %c0_2] : memref<152x128xf32, #tpu.memory_space<vmem>>, vector<32x96xf32>
    %c88 = arith.constant 88 : index
    %c0_3 = arith.constant 0 : index
    %3 = vector.load %arg2[%c88, %c0_3] : memref<152x128xf32, #tpu.memory_space<vmem>>, vector<32x96xf32>
    %c120 = arith.constant 120 : index
    %c0_4 = arith.constant 0 : index
    %4 = vector.load %arg2[%c120, %c0_4] : memref<152x128xf32, #tpu.memory_space<vmem>>, vector<32x128xf32>
    %c0_5 = arith.constant 0 : index
    %c0_6 = arith.constant 0 : index
    %5 = vector.load %arg3[%c0_5, %c0_6] : memref<8x128xf32, #tpu.memory_space<vmem>>, vector<1x96xf32>
    %c1 = arith.constant 1 : index
    %c0_7 = arith.constant 0 : index
    %6 = vector.load %arg3[%c1, %c0_7] : memref<8x128xf32, #tpu.memory_space<vmem>>, vector<1x96xf32>
    %c2 = arith.constant 2 : index
    %c0_8 = arith.constant 0 : index
    %7 = vector.load %arg3[%c2, %c0_8] : memref<8x128xf32, #tpu.memory_space<vmem>>, vector<1x96xf32>
    %c3 = arith.constant 3 : index
    %c0_9 = arith.constant 0 : index
    %8 = vector.load %arg3[%c3, %c0_9] : memref<8x128xf32, #tpu.memory_space<vmem>>, vector<1x96xf32>
    %c4 = arith.constant 4 : index
    %c0_10 = arith.constant 0 : index
    %9 = vector.load %arg3[%c4, %c0_10] : memref<8x128xf32, #tpu.memory_space<vmem>>, vector<1x128xf32>
    %c0_11 = arith.constant 0 : index
    %c0_12 = arith.constant 0 : index
    %10 = vector.load %arg1[%c0_11, %c0_12] : memref<64x24xf32, #tpu.memory_space<vmem>>, vector<64x24xf32>
    %cst = arith.constant dense<0.000000e+00> : vector<64x96xf32>
    %11 = tpu.matmul %10, %0, %cst {dimension_numbers = #tpu.dot_dimension_numbers<[1], [0], [0], [1], [0, 0, 1, 1], [], []>} : vector<64x24xf32>, vector<24x96xf32>, vector<64x96xf32> -> vector<64x96xf32>
    %12 = vector.broadcast %5 : vector<1x96xf32> to vector<64x96xf32>
    %13 = arith.addf %11, %12 : vector<64x96xf32>
    %c0_13 = arith.constant 0 : index
    %c0_14 = arith.constant 0 : index
    %14 = vector.load %arg6[%c0_13, %c0_14] : memref<64x96xf32, #tpu.memory_space<vmem>>, vector<64x96xf32>
    tpu.vector_store %arg6[%c0_13, %c0_14], %13 {strides = array<i32>} : memref<64x96xf32, #tpu.memory_space<vmem>>, vector<64x96xf32>,
    %cst_15 = arith.constant 0.000000e+00 : f32
    %15 = vector.broadcast %cst_15 : f32 to vector<8x32xf32>
    %c0_i32 = arith.constant 0 : i32
    %c8_i32 = arith.constant 8 : i32
    %16 = arith.muli %c0_i32, %c8_i32 : i32
    %17 = arith.index_cast %16 : i32 to index
    %c0_16 = arith.constant 0 : index
    %18 = vector.load %arg6[%17, %c0_16] : memref<64x96xf32, #tpu.memory_space<vmem>>, vector<8x96xf32>
    %cst_17 = arith.constant dense<0.000000e+00> : vector<8x96xf32>
    %19 = tpu.matmul %15, %1, %cst_17 {dimension_numbers = #tpu.dot_dimension_numbers<[1], [0], [0], [1], [0, 0, 1, 1], [], []>} : vector<8x32xf32>, vector<32x96xf32>, vector<8x96xf32> -> vector<8x96xf32>
    %20 = vector.broadcast %6 : vector<1x96xf32> to vector<8x96xf32>
    %21 = arith.addf %19, %20 : vector<8x96xf32>
    %22 = vector.extract_strided_slice %18 {offsets = [0, 0], sizes = [8, 32], strides = [1, 1]} : vector<8x96xf32> to vector<8x32xf32>
    %23 = vector.extract_strided_slice %21 {offsets = [0, 0], sizes = [8, 32], strides = [1, 1]} : vector<8x96xf32> to vector<8x32xf32>
    %24 = arith.addf %22, %23 : vector<8x32xf32>
    %25 = arith.negf %24 : vector<8x32xf32>
    %26 = math.exp %25 : vector<8x32xf32>
    %cst_18 = arith.constant 1.000000e+00 : f32
    %27 = vector.broadcast %cst_18 : f32 to vector<8x32xf32>
    %28 = arith.addf %27, %26 : vector<8x32xf32>
    %29 = arith.divf %27, %28 : vector<8x32xf32>
    %30 = vector.extract_strided_slice %18 {offsets = [0, 32], sizes = [8, 32], strides = [1, 1]} : vector<8x96xf32> to vector<8x32xf32>
    %31 = vector.extract_strided_slice %21 {offsets = [0, 32], sizes = [8, 32], strides = [1, 1]} : vector<8x96xf32> to vector<8x32xf32>
    %32 = arith.addf %30, %31 : vector<8x32xf32>
    %33 = arith.negf %32 : vector<8x32xf32>
    %34 = math.exp %33 : vector<8x32xf32>
    %cst_19 = arith.constant 1.000000e+00 : f32
    %35 = vector.broadcast %cst_19 : f32 to vector<8x32xf32>
    %36 = arith.addf %35, %34 : vector<8x32xf32>
    %37 = arith.divf %35, %36 : vector<8x32xf32>
    %38 = vector.extract_strided_slice %18 {offsets = [0, 64], sizes = [8, 32], strides = [1, 1]} : vector<8x96xf32> to vector<8x32xf32>
    %39 = vector.extract_strided_slice %21 {offsets = [0, 64], sizes = [8, 32], strides = [1, 1]} : vector<8x96xf32> to vector<8x32xf32>
    %40 = arith.mulf %29, %39 : vector<8x32xf32>
    %41 = arith.addf %38, %40 : vector<8x32xf32>
    %42 = math.tanh %41 : vector<8x32xf32>
    %43 = arith.subf %15, %42 : vector<8x32xf32>
    %44 = arith.mulf %37, %43 : vector<8x32xf32>
    %45 = arith.addf %42, %44 : vector<8x32xf32>
    %cst_20 = arith.constant dense<0.000000e+00> : vector<8x96xf32>
    %46 = tpu.matmul %45, %2, %cst_20 {dimension_numbers = #tpu.dot_dimension_numbers<[1], [0], [0], [1], [0, 0, 1, 1], [], []>} : vector<8x32xf32>, vector<32x96xf32>, vector<8x96xf32> -> vector<8x96xf32>
    %47 = vector.broadcast %7 : vector<1x96xf32> to vector<8x96xf32>
    %48 = arith.addf %46, %47 : vector<8x96xf32>
    %cst_21 = arith.constant dense<0.000000e+00> : vector<8x96xf32>
    %49 = tpu.matmul %15, %3, %cst_21 {dimension_numbers = #tpu.dot_dimension_numbers<[1], [0], [0], [1], [0, 0, 1, 1], [], []>} : vector<8x32xf32>, vector<32x96xf32>, vector<8x96xf32> -> vector<8x96xf32>
    %50 = vector.broadcast %8 : vector<1x96xf32> to vector<8x96xf32>
    %51 = arith.addf %49, %50 : vector<8x96xf32>
    %52 = vector.extract_strided_slice %48 {offsets = [0, 0], sizes = [8, 32], strides = [1, 1]} : vector<8x96xf32> to vector<8x32xf32>
    %53 = vector.extract_strided_slice %51 {offsets = [0, 0], sizes = [8, 32], strides = [1, 1]} : vector<8x96xf32> to vector<8x32xf32>
    %54 = arith.addf %52, %53 : vector<8x32xf32>
    %55 = arith.negf %54 : vector<8x32xf32>
    %56 = math.exp %55 : vector<8x32xf32>
    %cst_22 = arith.constant 1.000000e+00 : f32
    %57 = vector.broadcast %cst_22 : f32 to vector<8x32xf32>
    %58 = arith.addf %57, %56 : vector<8x32xf32>
    %59 = arith.divf %57, %58 : vector<8x32xf32>
    %60 = vector.extract_strided_slice %48 {offsets = [0, 32], sizes = [8, 32], strides = [1, 1]} : vector<8x96xf32> to vector<8x32xf32>
    %61 = vector.extract_strided_slice %51 {offsets = [0, 32], sizes = [8, 32], strides = [1, 1]} : vector<8x96xf32> to vector<8x32xf32>
    %62 = arith.addf %60, %61 : vector<8x32xf32>
    %63 = arith.negf %62 : vector<8x32xf32>
    %64 = math.exp %63 : vector<8x32xf32>
    %cst_23 = arith.constant 1.000000e+00 : f32
    %65 = vector.broadcast %cst_23 : f32 to vector<8x32xf32>
    %66 = arith.addf %65, %64 : vector<8x32xf32>
    %67 = arith.divf %65, %66 : vector<8x32xf32>
    %68 = vector.extract_strided_slice %48 {offsets = [0, 64], sizes = [8, 32], strides = [1, 1]} : vector<8x96xf32> to vector<8x32xf32>
    %69 = vector.extract_strided_slice %51 {offsets = [0, 64], sizes = [8, 32], strides = [1, 1]} : vector<8x96xf32> to vector<8x32xf32>
    %70 = arith.mulf %59, %69 : vector<8x32xf32>
    %71 = arith.addf %68, %70 : vector<8x32xf32>
    %72 = math.tanh %71 : vector<8x32xf32>
    %73 = arith.subf %15, %72 : vector<8x32xf32>
    %74 = arith.mulf %67, %73 : vector<8x32xf32>
    %75 = arith.addf %72, %74 : vector<8x32xf32>
    %76 = arith.index_cast %16 : i32 to index
    %c0_24 = arith.constant 0 : index
    %77 = vector.load %arg7[%76, %c0_24] : memref<64x32xf32, #tpu.memory_space<vmem>>, vector<8x32xf32>
    tpu.vector_store %arg7[%76, %c0_24], %75 {strides = array<i32>} : memref<64x32xf32, #tpu.memory_space<vmem>>, vector<8x32xf32>,
    %c1_i32 = arith.constant 1 : i32
    %c8_i32_25 = arith.constant 8 : i32
    %78 = arith.muli %c1_i32, %c8_i32_25 : i32
    %79 = arith.index_cast %78 : i32 to index
    %c0_26 = arith.constant 0 : index
    %80 = vector.load %arg6[%79, %c0_26] : memref<64x96xf32, #tpu.memory_space<vmem>>, vector<8x96xf32>
    %cst_27 = arith.constant dense<0.000000e+00> : vector<8x96xf32>
    %81 = tpu.matmul %45, %1, %cst_27 {dimension_numbers = #tpu.dot_dimension_numbers<[1], [0], [0], [1], [0, 0, 1, 1], [], []>} : vector<8x32xf32>, vector<32x96xf32>, vector<8x96xf32> -> vector<8x96xf32>
    %82 = vector.broadcast %6 : vector<1x96xf32> to vector<8x96xf32>
    %83 = arith.addf %81, %82 : vector<8x96xf32>
    %84 = vector.extract_strided_slice %80 {offsets = [0, 0], sizes = [8, 32], strides = [1, 1]} : vector<8x96xf32> to vector<8x32xf32>
    %85 = vector.extract_strided_slice %83 {offsets = [0, 0], sizes = [8, 32], strides = [1, 1]} : vector<8x96xf32> to vector<8x32xf32>
    %86 = arith.addf %84, %85 : vector<8x32xf32>
    %87 = arith.negf %86 : vector<8x32xf32>
    %88 = math.exp %87 : vector<8x32xf32>
    %cst_28 = arith.constant 1.000000e+00 : f32
    %89 = vector.broadcast %cst_28 : f32 to vector<8x32xf32>
    %90 = arith.addf %89, %88 : vector<8x32xf32>
    %91 = arith.divf %89, %90 : vector<8x32xf32>
    %92 = vector.extract_strided_slice %80 {offsets = [0, 32], sizes = [8, 32], strides = [1, 1]} : vector<8x96xf32> to vector<8x32xf32>
    %93 = vector.extract_strided_slice %83 {offsets = [0, 32], sizes = [8, 32], strides = [1, 1]} : vector<8x96xf32> to vector<8x32xf32>
    %94 = arith.addf %92, %93 : vector<8x32xf32>
    %95 = arith.negf %94 : vector<8x32xf32>
    %96 = math.exp %95 : vector<8x32xf32>
    %cst_29 = arith.constant 1.000000e+00 : f32
    %97 = vector.broadcast %cst_29 : f32 to vector<8x32xf32>
    %98 = arith.addf %97, %96 : vector<8x32xf32>
    %99 = arith.divf %97, %98 : vector<8x32xf32>
    %100 = vector.extract_strided_slice %80 {offsets = [0, 64], sizes = [8, 32], strides = [1, 1]} : vector<8x96xf32> to vector<8x32xf32>
    %101 = vector.extract_strided_slice %83 {offsets = [0, 64], sizes = [8, 32], strides = [1, 1]} : vector<8x96xf32> to vector<8x32xf32>
    %102 = arith.mulf %91, %101 : vector<8x32xf32>
    %103 = arith.addf %100, %102 : vector<8x32xf32>
    %104 = math.tanh %103 : vector<8x32xf32>
    %105 = arith.subf %45, %104 : vector<8x32xf32>
    %106 = arith.mulf %99, %105 : vector<8x32xf32>
    %107 = arith.addf %104, %106 : vector<8x32xf32>
    %cst_30 = arith.constant dense<0.000000e+00> : vector<8x96xf32>
    %108 = tpu.matmul %107, %2, %cst_30 {dimension_numbers = #tpu.dot_dimension_numbers<[1], [0], [0], [1], [0, 0, 1, 1], [], []>} : vector<8x32xf32>, vector<32x96xf32>, vector<8x96xf32> -> vector<8x96xf32>
    %109 = vector.broadcast %7 : vector<1x96xf32> to vector<8x96xf32>
    %110 = arith.addf %108, %109 : vector<8x96xf32>
    %cst_31 = arith.constant dense<0.000000e+00> : vector<8x96xf32>
    %111 = tpu.matmul %75, %3, %cst_31 {dimension_numbers = #tpu.dot_dimension_numbers<[1], [0], [0], [1], [0, 0, 1, 1], [], []>} : vector<8x32xf32>, vector<32x96xf32>, vector<8x96xf32> -> vector<8x96xf32>
    %112 = vector.broadcast %8 : vector<1x96xf32> to vector<8x96xf32>
    %113 = arith.addf %111, %112 : vector<8x96xf32>
    %114 = vector.extract_strided_slice %110 {offsets = [0, 0], sizes = [8, 32], strides = [1, 1]} : vector<8x96xf32> to vector<8x32xf32>
    %115 = vector.extract_strided_slice %113 {offsets = [0, 0], sizes = [8, 32], strides = [1, 1]} : vector<8x96xf32> to vector<8x32xf32>
    %116 = arith.addf %114, %115 : vector<8x32xf32>
    %117 = arith.negf %116 : vector<8x32xf32>
    %118 = math.exp %117 : vector<8x32xf32>
    %cst_32 = arith.constant 1.000000e+00 : f32
    %119 = vector.broadcast %cst_32 : f32 to vector<8x32xf32>
    %120 = arith.addf %119, %118 : vector<8x32xf32>
    %121 = arith.divf %119, %120 : vector<8x32xf32>
    %122 = vector.extract_strided_slice %110 {offsets = [0, 32], sizes = [8, 32], strides = [1, 1]} : vector<8x96xf32> to vector<8x32xf32>
    %123 = vector.extract_strided_slice %113 {offsets = [0, 32], sizes = [8, 32], strides = [1, 1]} : vector<8x96xf32> to vector<8x32xf32>
    %124 = arith.addf %122, %123 : vector<8x32xf32>
    %125 = arith.negf %124 : vector<8x32xf32>
    %126 = math.exp %125 : vector<8x32xf32>
    %cst_33 = arith.constant 1.000000e+00 : f32
    %127 = vector.broadcast %cst_33 : f32 to vector<8x32xf32>
    %128 = arith.addf %127, %126 : vector<8x32xf32>
    %129 = arith.divf %127, %128 : vector<8x32xf32>
    %130 = vector.extract_strided_slice %110 {offsets = [0, 64], sizes = [8, 32], strides = [1, 1]} : vector<8x96xf32> to vector<8x32xf32>
    %131 = vector.extract_strided_slice %113 {offsets = [0, 64], sizes = [8, 32], strides = [1, 1]} : vector<8x96xf32> to vector<8x32xf32>
    %132 = arith.mulf %121, %131 : vector<8x32xf32>
    %133 = arith.addf %130, %132 : vector<8x32xf32>
    %134 = math.tanh %133 : vector<8x32xf32>
    %135 = arith.subf %75, %134 : vector<8x32xf32>
    %136 = arith.mulf %129, %135 : vector<8x32xf32>
    %137 = arith.addf %134, %136 : vector<8x32xf32>
    %138 = arith.index_cast %78 : i32 to index
    %c0_34 = arith.constant 0 : index
    %139 = vector.load %arg7[%138, %c0_34] : memref<64x32xf32, #tpu.memory_space<vmem>>, vector<8x32xf32>
    tpu.vector_store %arg7[%138, %c0_34], %137 {strides = array<i32>} : memref<64x32xf32, #tpu.memory_space<vmem>>, vector<8x32xf32>,
    %c2_i32 = arith.constant 2 : i32
    %c8_i32_35 = arith.constant 8 : i32
    %140 = arith.muli %c2_i32, %c8_i32_35 : i32
    %141 = arith.index_cast %140 : i32 to index
    %c0_36 = arith.constant 0 : index
    %142 = vector.load %arg6[%141, %c0_36] : memref<64x96xf32, #tpu.memory_space<vmem>>, vector<8x96xf32>
    %cst_37 = arith.constant dense<0.000000e+00> : vector<8x96xf32>
    %143 = tpu.matmul %107, %1, %cst_37 {dimension_numbers = #tpu.dot_dimension_numbers<[1], [0], [0], [1], [0, 0, 1, 1], [], []>} : vector<8x32xf32>, vector<32x96xf32>, vector<8x96xf32> -> vector<8x96xf32>
    %144 = vector.broadcast %6 : vector<1x96xf32> to vector<8x96xf32>
    %145 = arith.addf %143, %144 : vector<8x96xf32>
    %146 = vector.extract_strided_slice %142 {offsets = [0, 0], sizes = [8, 32], strides = [1, 1]} : vector<8x96xf32> to vector<8x32xf32>
    %147 = vector.extract_strided_slice %145 {offsets = [0, 0], sizes = [8, 32], strides = [1, 1]} : vector<8x96xf32> to vector<8x32xf32>
    %148 = arith.addf %146, %147 : vector<8x32xf32>
    %149 = arith.negf %148 : vector<8x32xf32>
    %150 = math.exp %149 : vector<8x32xf32>
    %cst_38 = arith.constant 1.000000e+00 : f32
    %151 = vector.broadcast %cst_38 : f32 to vector<8x32xf32>
    %152 = arith.addf %151, %150 : vector<8x32xf32>
    %153 = arith.divf %151, %152 : vector<8x32xf32>
    %154 = vector.extract_strided_slice %142 {offsets = [0, 32], sizes = [8, 32], strides = [1, 1]} : vector<8x96xf32> to vector<8x32xf32>
    %155 = vector.extract_strided_slice %145 {offsets = [0, 32], sizes = [8, 32], strides = [1, 1]} : vector<8x96xf32> to vector<8x32xf32>
    %156 = arith.addf %154, %155 : vector<8x32xf32>
    %157 = arith.negf %156 : vector<8x32xf32>
    %158 = math.exp %157 : vector<8x32xf32>
    %cst_39 = arith.constant 1.000000e+00 : f32
    %159 = vector.broadcast %cst_39 : f32 to vector<8x32xf32>
    %160 = arith.addf %159, %158 : vector<8x32xf32>
    %161 = arith.divf %159, %160 : vector<8x32xf32>
    %162 = vector.extract_strided_slice %142 {offsets = [0, 64], sizes = [8, 32], strides = [1, 1]} : vector<8x96xf32> to vector<8x32xf32>
    %163 = vector.extract_strided_slice %145 {offsets = [0, 64], sizes = [8, 32], strides = [1, 1]} : vector<8x96xf32> to vector<8x32xf32>
    %164 = arith.mulf %153, %163 : vector<8x32xf32>
    %165 = arith.addf %162, %164 : vector<8x32xf32>
    %166 = math.tanh %165 : vector<8x32xf32>
    %167 = arith.subf %107, %166 : vector<8x32xf32>
    %168 = arith.mulf %161, %167 : vector<8x32xf32>
    %169 = arith.addf %166, %168 : vector<8x32xf32>
    %cst_40 = arith.constant dense<0.000000e+00> : vector<8x96xf32>
    %170 = tpu.matmul %169, %2, %cst_40 {dimension_numbers = #tpu.dot_dimension_numbers<[1], [0], [0], [1], [0, 0, 1, 1], [], []>} : vector<8x32xf32>, vector<32x96xf32>, vector<8x96xf32> -> vector<8x96xf32>
    %171 = vector.broadcast %7 : vector<1x96xf32> to vector<8x96xf32>
    %172 = arith.addf %170, %171 : vector<8x96xf32>
    %cst_41 = arith.constant dense<0.000000e+00> : vector<8x96xf32>
    %173 = tpu.matmul %137, %3, %cst_41 {dimension_numbers = #tpu.dot_dimension_numbers<[1], [0], [0], [1], [0, 0, 1, 1], [], []>} : vector<8x32xf32>, vector<32x96xf32>, vector<8x96xf32> -> vector<8x96xf32>
    %174 = vector.broadcast %8 : vector<1x96xf32> to vector<8x96xf32>
    %175 = arith.addf %173, %174 : vector<8x96xf32>
    %176 = vector.extract_strided_slice %172 {offsets = [0, 0], sizes = [8, 32], strides = [1, 1]} : vector<8x96xf32> to vector<8x32xf32>
    %177 = vector.extract_strided_slice %175 {offsets = [0, 0], sizes = [8, 32], strides = [1, 1]} : vector<8x96xf32> to vector<8x32xf32>
    %178 = arith.addf %176, %177 : vector<8x32xf32>
    %179 = arith.negf %178 : vector<8x32xf32>
    %180 = math.exp %179 : vector<8x32xf32>
    %cst_42 = arith.constant 1.000000e+00 : f32
    %181 = vector.broadcast %cst_42 : f32 to vector<8x32xf32>
    %182 = arith.addf %181, %180 : vector<8x32xf32>
    %183 = arith.divf %181, %182 : vector<8x32xf32>
    %184 = vector.extract_strided_slice %172 {offsets = [0, 32], sizes = [8, 32], strides = [1, 1]} : vector<8x96xf32> to vector<8x32xf32>
    %185 = vector.extract_strided_slice %175 {offsets = [0, 32], sizes = [8, 32], strides = [1, 1]} : vector<8x96xf32> to vector<8x32xf32>
    %186 = arith.addf %184, %185 : vector<8x32xf32>
    %187 = arith.negf %186 : vector<8x32xf32>
    %188 = math.exp %187 : vector<8x32xf32>
    %cst_43 = arith.constant 1.000000e+00 : f32
    %189 = vector.broadcast %cst_43 : f32 to vector<8x32xf32>
    %190 = arith.addf %189, %188 : vector<8x32xf32>
    %191 = arith.divf %189, %190 : vector<8x32xf32>
    %192 = vector.extract_strided_slice %172 {offsets = [0, 64], sizes = [8, 32], strides = [1, 1]} : vector<8x96xf32> to vector<8x32xf32>
    %193 = vector.extract_strided_slice %175 {offsets = [0, 64], sizes = [8, 32], strides = [1, 1]} : vector<8x96xf32> to vector<8x32xf32>
    %194 = arith.mulf %183, %193 : vector<8x32xf32>
    %195 = arith.addf %192, %194 : vector<8x32xf32>
    %196 = math.tanh %195 : vector<8x32xf32>
    %197 = arith.subf %137, %196 : vector<8x32xf32>
    %198 = arith.mulf %191, %197 : vector<8x32xf32>
    %199 = arith.addf %196, %198 : vector<8x32xf32>
    %200 = arith.index_cast %140 : i32 to index
    %c0_44 = arith.constant 0 : index
    %201 = vector.load %arg7[%200, %c0_44] : memref<64x32xf32, #tpu.memory_space<vmem>>, vector<8x32xf32>
    tpu.vector_store %arg7[%200, %c0_44], %199 {strides = array<i32>} : memref<64x32xf32, #tpu.memory_space<vmem>>, vector<8x32xf32>,
    %c3_i32 = arith.constant 3 : i32
    %c8_i32_45 = arith.constant 8 : i32
    %202 = arith.muli %c3_i32, %c8_i32_45 : i32
    %203 = arith.index_cast %202 : i32 to index
    %c0_46 = arith.constant 0 : index
    %204 = vector.load %arg6[%203, %c0_46] : memref<64x96xf32, #tpu.memory_space<vmem>>, vector<8x96xf32>
    %cst_47 = arith.constant dense<0.000000e+00> : vector<8x96xf32>
    %205 = tpu.matmul %169, %1, %cst_47 {dimension_numbers = #tpu.dot_dimension_numbers<[1], [0], [0], [1], [0, 0, 1, 1], [], []>} : vector<8x32xf32>, vector<32x96xf32>, vector<8x96xf32> -> vector<8x96xf32>
    %206 = vector.broadcast %6 : vector<1x96xf32> to vector<8x96xf32>
    %207 = arith.addf %205, %206 : vector<8x96xf32>
    %208 = vector.extract_strided_slice %204 {offsets = [0, 0], sizes = [8, 32], strides = [1, 1]} : vector<8x96xf32> to vector<8x32xf32>
    %209 = vector.extract_strided_slice %207 {offsets = [0, 0], sizes = [8, 32], strides = [1, 1]} : vector<8x96xf32> to vector<8x32xf32>
    %210 = arith.addf %208, %209 : vector<8x32xf32>
    %211 = arith.negf %210 : vector<8x32xf32>
    %212 = math.exp %211 : vector<8x32xf32>
    %cst_48 = arith.constant 1.000000e+00 : f32
    %213 = vector.broadcast %cst_48 : f32 to vector<8x32xf32>
    %214 = arith.addf %213, %212 : vector<8x32xf32>
    %215 = arith.divf %213, %214 : vector<8x32xf32>
    %216 = vector.extract_strided_slice %204 {offsets = [0, 32], sizes = [8, 32], strides = [1, 1]} : vector<8x96xf32> to vector<8x32xf32>
    %217 = vector.extract_strided_slice %207 {offsets = [0, 32], sizes = [8, 32], strides = [1, 1]} : vector<8x96xf32> to vector<8x32xf32>
    %218 = arith.addf %216, %217 : vector<8x32xf32>
    %219 = arith.negf %218 : vector<8x32xf32>
    %220 = math.exp %219 : vector<8x32xf32>
    %cst_49 = arith.constant 1.000000e+00 : f32
    %221 = vector.broadcast %cst_49 : f32 to vector<8x32xf32>
    %222 = arith.addf %221, %220 : vector<8x32xf32>
    %223 = arith.divf %221, %222 : vector<8x32xf32>
    %224 = vector.extract_strided_slice %204 {offsets = [0, 64], sizes = [8, 32], strides = [1, 1]} : vector<8x96xf32> to vector<8x32xf32>
    %225 = vector.extract_strided_slice %207 {offsets = [0, 64], sizes = [8, 32], strides = [1, 1]} : vector<8x96xf32> to vector<8x32xf32>
    %226 = arith.mulf %215, %225 : vector<8x32xf32>
    %227 = arith.addf %224, %226 : vector<8x32xf32>
    %228 = math.tanh %227 : vector<8x32xf32>
    %229 = arith.subf %169, %228 : vector<8x32xf32>
    %230 = arith.mulf %223, %229 : vector<8x32xf32>
    %231 = arith.addf %228, %230 : vector<8x32xf32>
    %cst_50 = arith.constant dense<0.000000e+00> : vector<8x96xf32>
    %232 = tpu.matmul %231, %2, %cst_50 {dimension_numbers = #tpu.dot_dimension_numbers<[1], [0], [0], [1], [0, 0, 1, 1], [], []>} : vector<8x32xf32>, vector<32x96xf32>, vector<8x96xf32> -> vector<8x96xf32>
    %233 = vector.broadcast %7 : vector<1x96xf32> to vector<8x96xf32>
    %234 = arith.addf %232, %233 : vector<8x96xf32>
    %cst_51 = arith.constant dense<0.000000e+00> : vector<8x96xf32>
    %235 = tpu.matmul %199, %3, %cst_51 {dimension_numbers = #tpu.dot_dimension_numbers<[1], [0], [0], [1], [0, 0, 1, 1], [], []>} : vector<8x32xf32>, vector<32x96xf32>, vector<8x96xf32> -> vector<8x96xf32>
    %236 = vector.broadcast %8 : vector<1x96xf32> to vector<8x96xf32>
    %237 = arith.addf %235, %236 : vector<8x96xf32>
    %238 = vector.extract_strided_slice %234 {offsets = [0, 0], sizes = [8, 32], strides = [1, 1]} : vector<8x96xf32> to vector<8x32xf32>
    %239 = vector.extract_strided_slice %237 {offsets = [0, 0], sizes = [8, 32], strides = [1, 1]} : vector<8x96xf32> to vector<8x32xf32>
    %240 = arith.addf %238, %239 : vector<8x32xf32>
    %241 = arith.negf %240 : vector<8x32xf32>
    %242 = math.exp %241 : vector<8x32xf32>
    %cst_52 = arith.constant 1.000000e+00 : f32
    %243 = vector.broadcast %cst_52 : f32 to vector<8x32xf32>
    %244 = arith.addf %243, %242 : vector<8x32xf32>
    %245 = arith.divf %243, %244 : vector<8x32xf32>
    %246 = vector.extract_strided_slice %234 {offsets = [0, 32], sizes = [8, 32], strides = [1, 1]} : vector<8x96xf32> to vector<8x32xf32>
    %247 = vector.extract_strided_slice %237 {offsets = [0, 32], sizes = [8, 32], strides = [1, 1]} : vector<8x96xf32> to vector<8x32xf32>
    %248 = arith.addf %246, %247 : vector<8x32xf32>
    %249 = arith.negf %248 : vector<8x32xf32>
    %250 = math.exp %249 : vector<8x32xf32>
    %cst_53 = arith.constant 1.000000e+00 : f32
    %251 = vector.broadcast %cst_53 : f32 to vector<8x32xf32>
    %252 = arith.addf %251, %250 : vector<8x32xf32>
    %253 = arith.divf %251, %252 : vector<8x32xf32>
    %254 = vector.extract_strided_slice %234 {offsets = [0, 64], sizes = [8, 32], strides = [1, 1]} : vector<8x96xf32> to vector<8x32xf32>
    %255 = vector.extract_strided_slice %237 {offsets = [0, 64], sizes = [8, 32], strides = [1, 1]} : vector<8x96xf32> to vector<8x32xf32>
    %256 = arith.mulf %245, %255 : vector<8x32xf32>
    %257 = arith.addf %254, %256 : vector<8x32xf32>
    %258 = math.tanh %257 : vector<8x32xf32>
    %259 = arith.subf %199, %258 : vector<8x32xf32>
    %260 = arith.mulf %253, %259 : vector<8x32xf32>
    %261 = arith.addf %258, %260 : vector<8x32xf32>
    %262 = arith.index_cast %202 : i32 to index
    %c0_54 = arith.constant 0 : index
    %263 = vector.load %arg7[%262, %c0_54] : memref<64x32xf32, #tpu.memory_space<vmem>>, vector<8x32xf32>
    tpu.vector_store %arg7[%262, %c0_54], %261 {strides = array<i32>} : memref<64x32xf32, #tpu.memory_space<vmem>>, vector<8x32xf32>,
    %c4_i32 = arith.constant 4 : i32
    %c8_i32_55 = arith.constant 8 : i32
    %264 = arith.muli %c4_i32, %c8_i32_55 : i32
    %265 = arith.index_cast %264 : i32 to index
    %c0_56 = arith.constant 0 : index
    %266 = vector.load %arg6[%265, %c0_56] : memref<64x96xf32, #tpu.memory_space<vmem>>, vector<8x96xf32>
    %cst_57 = arith.constant dense<0.000000e+00> : vector<8x96xf32>
    %267 = tpu.matmul %231, %1, %cst_57 {dimension_numbers = #tpu.dot_dimension_numbers<[1], [0], [0], [1], [0, 0, 1, 1], [], []>} : vector<8x32xf32>, vector<32x96xf32>, vector<8x96xf32> -> vector<8x96xf32>
    %268 = vector.broadcast %6 : vector<1x96xf32> to vector<8x96xf32>
    %269 = arith.addf %267, %268 : vector<8x96xf32>
    %270 = vector.extract_strided_slice %266 {offsets = [0, 0], sizes = [8, 32], strides = [1, 1]} : vector<8x96xf32> to vector<8x32xf32>
    %271 = vector.extract_strided_slice %269 {offsets = [0, 0], sizes = [8, 32], strides = [1, 1]} : vector<8x96xf32> to vector<8x32xf32>
    %272 = arith.addf %270, %271 : vector<8x32xf32>
    %273 = arith.negf %272 : vector<8x32xf32>
    %274 = math.exp %273 : vector<8x32xf32>
    %cst_58 = arith.constant 1.000000e+00 : f32
    %275 = vector.broadcast %cst_58 : f32 to vector<8x32xf32>
    %276 = arith.addf %275, %274 : vector<8x32xf32>
    %277 = arith.divf %275, %276 : vector<8x32xf32>
    %278 = vector.extract_strided_slice %266 {offsets = [0, 32], sizes = [8, 32], strides = [1, 1]} : vector<8x96xf32> to vector<8x32xf32>
    %279 = vector.extract_strided_slice %269 {offsets = [0, 32], sizes = [8, 32], strides = [1, 1]} : vector<8x96xf32> to vector<8x32xf32>
    %280 = arith.addf %278, %279 : vector<8x32xf32>
    %281 = arith.negf %280 : vector<8x32xf32>
    %282 = math.exp %281 : vector<8x32xf32>
    %cst_59 = arith.constant 1.000000e+00 : f32
    %283 = vector.broadcast %cst_59 : f32 to vector<8x32xf32>
    %284 = arith.addf %283, %282 : vector<8x32xf32>
    %285 = arith.divf %283, %284 : vector<8x32xf32>
    %286 = vector.extract_strided_slice %266 {offsets = [0, 64], sizes = [8, 32], strides = [1, 1]} : vector<8x96xf32> to vector<8x32xf32>
    %287 = vector.extract_strided_slice %269 {offsets = [0, 64], sizes = [8, 32], strides = [1, 1]} : vector<8x96xf32> to vector<8x32xf32>
    %288 = arith.mulf %277, %287 : vector<8x32xf32>
    %289 = arith.addf %286, %288 : vector<8x32xf32>
    %290 = math.tanh %289 : vector<8x32xf32>
    %291 = arith.subf %231, %290 : vector<8x32xf32>
    %292 = arith.mulf %285, %291 : vector<8x32xf32>
    %293 = arith.addf %290, %292 : vector<8x32xf32>
    %cst_60 = arith.constant dense<0.000000e+00> : vector<8x96xf32>
    %294 = tpu.matmul %293, %2, %cst_60 {dimension_numbers = #tpu.dot_dimension_numbers<[1], [0], [0], [1], [0, 0, 1, 1], [], []>} : vector<8x32xf32>, vector<32x96xf32>, vector<8x96xf32> -> vector<8x96xf32>
    %295 = vector.broadcast %7 : vector<1x96xf32> to vector<8x96xf32>
    %296 = arith.addf %294, %295 : vector<8x96xf32>
    %cst_61 = arith.constant dense<0.000000e+00> : vector<8x96xf32>
    %297 = tpu.matmul %261, %3, %cst_61 {dimension_numbers = #tpu.dot_dimension_numbers<[1], [0], [0], [1], [0, 0, 1, 1], [], []>} : vector<8x32xf32>, vector<32x96xf32>, vector<8x96xf32> -> vector<8x96xf32>
    %298 = vector.broadcast %8 : vector<1x96xf32> to vector<8x96xf32>
    %299 = arith.addf %297, %298 : vector<8x96xf32>
    %300 = vector.extract_strided_slice %296 {offsets = [0, 0], sizes = [8, 32], strides = [1, 1]} : vector<8x96xf32> to vector<8x32xf32>
    %301 = vector.extract_strided_slice %299 {offsets = [0, 0], sizes = [8, 32], strides = [1, 1]} : vector<8x96xf32> to vector<8x32xf32>
    %302 = arith.addf %300, %301 : vector<8x32xf32>
    %303 = arith.negf %302 : vector<8x32xf32>
    %304 = math.exp %303 : vector<8x32xf32>
    %cst_62 = arith.constant 1.000000e+00 : f32
    %305 = vector.broadcast %cst_62 : f32 to vector<8x32xf32>
    %306 = arith.addf %305, %304 : vector<8x32xf32>
    %307 = arith.divf %305, %306 : vector<8x32xf32>
    %308 = vector.extract_strided_slice %296 {offsets = [0, 32], sizes = [8, 32], strides = [1, 1]} : vector<8x96xf32> to vector<8x32xf32>
    %309 = vector.extract_strided_slice %299 {offsets = [0, 32], sizes = [8, 32], strides = [1, 1]} : vector<8x96xf32> to vector<8x32xf32>
    %310 = arith.addf %308, %309 : vector<8x32xf32>
    %311 = arith.negf %310 : vector<8x32xf32>
    %312 = math.exp %311 : vector<8x32xf32>
    %cst_63 = arith.constant 1.000000e+00 : f32
    %313 = vector.broadcast %cst_63 : f32 to vector<8x32xf32>
    %314 = arith.addf %313, %312 : vector<8x32xf32>
    %315 = arith.divf %313, %314 : vector<8x32xf32>
    %316 = vector.extract_strided_slice %296 {offsets = [0, 64], sizes = [8, 32], strides = [1, 1]} : vector<8x96xf32> to vector<8x32xf32>
    %317 = vector.extract_strided_slice %299 {offsets = [0, 64], sizes = [8, 32], strides = [1, 1]} : vector<8x96xf32> to vector<8x32xf32>
    %318 = arith.mulf %307, %317 : vector<8x32xf32>
    %319 = arith.addf %316, %318 : vector<8x32xf32>
    %320 = math.tanh %319 : vector<8x32xf32>
    %321 = arith.subf %261, %320 : vector<8x32xf32>
    %322 = arith.mulf %315, %321 : vector<8x32xf32>
    %323 = arith.addf %320, %322 : vector<8x32xf32>
    %324 = arith.index_cast %264 : i32 to index
    %c0_64 = arith.constant 0 : index
    %325 = vector.load %arg7[%324, %c0_64] : memref<64x32xf32, #tpu.memory_space<vmem>>, vector<8x32xf32>
    tpu.vector_store %arg7[%324, %c0_64], %323 {strides = array<i32>} : memref<64x32xf32, #tpu.memory_space<vmem>>, vector<8x32xf32>,
    %c5_i32 = arith.constant 5 : i32
    %c8_i32_65 = arith.constant 8 : i32
    %326 = arith.muli %c5_i32, %c8_i32_65 : i32
    %327 = arith.index_cast %326 : i32 to index
    %c0_66 = arith.constant 0 : index
    %328 = vector.load %arg6[%327, %c0_66] : memref<64x96xf32, #tpu.memory_space<vmem>>, vector<8x96xf32>
    %cst_67 = arith.constant dense<0.000000e+00> : vector<8x96xf32>
    %329 = tpu.matmul %293, %1, %cst_67 {dimension_numbers = #tpu.dot_dimension_numbers<[1], [0], [0], [1], [0, 0, 1, 1], [], []>} : vector<8x32xf32>, vector<32x96xf32>, vector<8x96xf32> -> vector<8x96xf32>
    %330 = vector.broadcast %6 : vector<1x96xf32> to vector<8x96xf32>
    %331 = arith.addf %329, %330 : vector<8x96xf32>
    %332 = vector.extract_strided_slice %328 {offsets = [0, 0], sizes = [8, 32], strides = [1, 1]} : vector<8x96xf32> to vector<8x32xf32>
    %333 = vector.extract_strided_slice %331 {offsets = [0, 0], sizes = [8, 32], strides = [1, 1]} : vector<8x96xf32> to vector<8x32xf32>
    %334 = arith.addf %332, %333 : vector<8x32xf32>
    %335 = arith.negf %334 : vector<8x32xf32>
    %336 = math.exp %335 : vector<8x32xf32>
    %cst_68 = arith.constant 1.000000e+00 : f32
    %337 = vector.broadcast %cst_68 : f32 to vector<8x32xf32>
    %338 = arith.addf %337, %336 : vector<8x32xf32>
    %339 = arith.divf %337, %338 : vector<8x32xf32>
    %340 = vector.extract_strided_slice %328 {offsets = [0, 32], sizes = [8, 32], strides = [1, 1]} : vector<8x96xf32> to vector<8x32xf32>
    %341 = vector.extract_strided_slice %331 {offsets = [0, 32], sizes = [8, 32], strides = [1, 1]} : vector<8x96xf32> to vector<8x32xf32>
    %342 = arith.addf %340, %341 : vector<8x32xf32>
    %343 = arith.negf %342 : vector<8x32xf32>
    %344 = math.exp %343 : vector<8x32xf32>
    %cst_69 = arith.constant 1.000000e+00 : f32
    %345 = vector.broadcast %cst_69 : f32 to vector<8x32xf32>
    %346 = arith.addf %345, %344 : vector<8x32xf32>
    %347 = arith.divf %345, %346 : vector<8x32xf32>
    %348 = vector.extract_strided_slice %328 {offsets = [0, 64], sizes = [8, 32], strides = [1, 1]} : vector<8x96xf32> to vector<8x32xf32>
    %349 = vector.extract_strided_slice %331 {offsets = [0, 64], sizes = [8, 32], strides = [1, 1]} : vector<8x96xf32> to vector<8x32xf32>
    %350 = arith.mulf %339, %349 : vector<8x32xf32>
    %351 = arith.addf %348, %350 : vector<8x32xf32>
    %352 = math.tanh %351 : vector<8x32xf32>
    %353 = arith.subf %293, %352 : vector<8x32xf32>
    %354 = arith.mulf %347, %353 : vector<8x32xf32>
    %355 = arith.addf %352, %354 : vector<8x32xf32>
    %cst_70 = arith.constant dense<0.000000e+00> : vector<8x96xf32>
    %356 = tpu.matmul %355, %2, %cst_70 {dimension_numbers = #tpu.dot_dimension_numbers<[1], [0], [0], [1], [0, 0, 1, 1], [], []>} : vector<8x32xf32>, vector<32x96xf32>, vector<8x96xf32> -> vector<8x96xf32>
    %357 = vector.broadcast %7 : vector<1x96xf32> to vector<8x96xf32>
    %358 = arith.addf %356, %357 : vector<8x96xf32>
    %cst_71 = arith.constant dense<0.000000e+00> : vector<8x96xf32>
    %359 = tpu.matmul %323, %3, %cst_71 {dimension_numbers = #tpu.dot_dimension_numbers<[1], [0], [0], [1], [0, 0, 1, 1], [], []>} : vector<8x32xf32>, vector<32x96xf32>, vector<8x96xf32> -> vector<8x96xf32>
    %360 = vector.broadcast %8 : vector<1x96xf32> to vector<8x96xf32>
    %361 = arith.addf %359, %360 : vector<8x96xf32>
    %362 = vector.extract_strided_slice %358 {offsets = [0, 0], sizes = [8, 32], strides = [1, 1]} : vector<8x96xf32> to vector<8x32xf32>
    %363 = vector.extract_strided_slice %361 {offsets = [0, 0], sizes = [8, 32], strides = [1, 1]} : vector<8x96xf32> to vector<8x32xf32>
    %364 = arith.addf %362, %363 : vector<8x32xf32>
    %365 = arith.negf %364 : vector<8x32xf32>
    %366 = math.exp %365 : vector<8x32xf32>
    %cst_72 = arith.constant 1.000000e+00 : f32
    %367 = vector.broadcast %cst_72 : f32 to vector<8x32xf32>
    %368 = arith.addf %367, %366 : vector<8x32xf32>
    %369 = arith.divf %367, %368 : vector<8x32xf32>
    %370 = vector.extract_strided_slice %358 {offsets = [0, 32], sizes = [8, 32], strides = [1, 1]} : vector<8x96xf32> to vector<8x32xf32>
    %371 = vector.extract_strided_slice %361 {offsets = [0, 32], sizes = [8, 32], strides = [1, 1]} : vector<8x96xf32> to vector<8x32xf32>
    %372 = arith.addf %370, %371 : vector<8x32xf32>
    %373 = arith.negf %372 : vector<8x32xf32>
    %374 = math.exp %373 : vector<8x32xf32>
    %cst_73 = arith.constant 1.000000e+00 : f32
    %375 = vector.broadcast %cst_73 : f32 to vector<8x32xf32>
    %376 = arith.addf %375, %374 : vector<8x32xf32>
    %377 = arith.divf %375, %376 : vector<8x32xf32>
    %378 = vector.extract_strided_slice %358 {offsets = [0, 64], sizes = [8, 32], strides = [1, 1]} : vector<8x96xf32> to vector<8x32xf32>
    %379 = vector.extract_strided_slice %361 {offsets = [0, 64], sizes = [8, 32], strides = [1, 1]} : vector<8x96xf32> to vector<8x32xf32>
    %380 = arith.mulf %369, %379 : vector<8x32xf32>
    %381 = arith.addf %378, %380 : vector<8x32xf32>
    %382 = math.tanh %381 : vector<8x32xf32>
    %383 = arith.subf %323, %382 : vector<8x32xf32>
    %384 = arith.mulf %377, %383 : vector<8x32xf32>
    %385 = arith.addf %382, %384 : vector<8x32xf32>
    %386 = arith.index_cast %326 : i32 to index
    %c0_74 = arith.constant 0 : index
    %387 = vector.load %arg7[%386, %c0_74] : memref<64x32xf32, #tpu.memory_space<vmem>>, vector<8x32xf32>
    tpu.vector_store %arg7[%386, %c0_74], %385 {strides = array<i32>} : memref<64x32xf32, #tpu.memory_space<vmem>>, vector<8x32xf32>,
    %c6_i32 = arith.constant 6 : i32
    %c8_i32_75 = arith.constant 8 : i32
    %388 = arith.muli %c6_i32, %c8_i32_75 : i32
    %389 = arith.index_cast %388 : i32 to index
    %c0_76 = arith.constant 0 : index
    %390 = vector.load %arg6[%389, %c0_76] : memref<64x96xf32, #tpu.memory_space<vmem>>, vector<8x96xf32>
    %cst_77 = arith.constant dense<0.000000e+00> : vector<8x96xf32>
    %391 = tpu.matmul %355, %1, %cst_77 {dimension_numbers = #tpu.dot_dimension_numbers<[1], [0], [0], [1], [0, 0, 1, 1], [], []>} : vector<8x32xf32>, vector<32x96xf32>, vector<8x96xf32> -> vector<8x96xf32>
    %392 = vector.broadcast %6 : vector<1x96xf32> to vector<8x96xf32>
    %393 = arith.addf %391, %392 : vector<8x96xf32>
    %394 = vector.extract_strided_slice %390 {offsets = [0, 0], sizes = [8, 32], strides = [1, 1]} : vector<8x96xf32> to vector<8x32xf32>
    %395 = vector.extract_strided_slice %393 {offsets = [0, 0], sizes = [8, 32], strides = [1, 1]} : vector<8x96xf32> to vector<8x32xf32>
    %396 = arith.addf %394, %395 : vector<8x32xf32>
    %397 = arith.negf %396 : vector<8x32xf32>
    %398 = math.exp %397 : vector<8x32xf32>
    %cst_78 = arith.constant 1.000000e+00 : f32
    %399 = vector.broadcast %cst_78 : f32 to vector<8x32xf32>
    %400 = arith.addf %399, %398 : vector<8x32xf32>
    %401 = arith.divf %399, %400 : vector<8x32xf32>
    %402 = vector.extract_strided_slice %390 {offsets = [0, 32], sizes = [8, 32], strides = [1, 1]} : vector<8x96xf32> to vector<8x32xf32>
    %403 = vector.extract_strided_slice %393 {offsets = [0, 32], sizes = [8, 32], strides = [1, 1]} : vector<8x96xf32> to vector<8x32xf32>
    %404 = arith.addf %402, %403 : vector<8x32xf32>
    %405 = arith.negf %404 : vector<8x32xf32>
    %406 = math.exp %405 : vector<8x32xf32>
    %cst_79 = arith.constant 1.000000e+00 : f32
    %407 = vector.broadcast %cst_79 : f32 to vector<8x32xf32>
    %408 = arith.addf %407, %406 : vector<8x32xf32>
    %409 = arith.divf %407, %408 : vector<8x32xf32>
    %410 = vector.extract_strided_slice %390 {offsets = [0, 64], sizes = [8, 32], strides = [1, 1]} : vector<8x96xf32> to vector<8x32xf32>
    %411 = vector.extract_strided_slice %393 {offsets = [0, 64], sizes = [8, 32], strides = [1, 1]} : vector<8x96xf32> to vector<8x32xf32>
    %412 = arith.mulf %401, %411 : vector<8x32xf32>
    %413 = arith.addf %410, %412 : vector<8x32xf32>
    %414 = math.tanh %413 : vector<8x32xf32>
    %415 = arith.subf %355, %414 : vector<8x32xf32>
    %416 = arith.mulf %409, %415 : vector<8x32xf32>
    %417 = arith.addf %414, %416 : vector<8x32xf32>
    %cst_80 = arith.constant dense<0.000000e+00> : vector<8x96xf32>
    %418 = tpu.matmul %417, %2, %cst_80 {dimension_numbers = #tpu.dot_dimension_numbers<[1], [0], [0], [1], [0, 0, 1, 1], [], []>} : vector<8x32xf32>, vector<32x96xf32>, vector<8x96xf32> -> vector<8x96xf32>
    %419 = vector.broadcast %7 : vector<1x96xf32> to vector<8x96xf32>
    %420 = arith.addf %418, %419 : vector<8x96xf32>
    %cst_81 = arith.constant dense<0.000000e+00> : vector<8x96xf32>
    %421 = tpu.matmul %385, %3, %cst_81 {dimension_numbers = #tpu.dot_dimension_numbers<[1], [0], [0], [1], [0, 0, 1, 1], [], []>} : vector<8x32xf32>, vector<32x96xf32>, vector<8x96xf32> -> vector<8x96xf32>
    %422 = vector.broadcast %8 : vector<1x96xf32> to vector<8x96xf32>
    %423 = arith.addf %421, %422 : vector<8x96xf32>
    %424 = vector.extract_strided_slice %420 {offsets = [0, 0], sizes = [8, 32], strides = [1, 1]} : vector<8x96xf32> to vector<8x32xf32>
    %425 = vector.extract_strided_slice %423 {offsets = [0, 0], sizes = [8, 32], strides = [1, 1]} : vector<8x96xf32> to vector<8x32xf32>
    %426 = arith.addf %424, %425 : vector<8x32xf32>
    %427 = arith.negf %426 : vector<8x32xf32>
    %428 = math.exp %427 : vector<8x32xf32>
    %cst_82 = arith.constant 1.000000e+00 : f32
    %429 = vector.broadcast %cst_82 : f32 to vector<8x32xf32>
    %430 = arith.addf %429, %428 : vector<8x32xf32>
    %431 = arith.divf %429, %430 : vector<8x32xf32>
    %432 = vector.extract_strided_slice %420 {offsets = [0, 32], sizes = [8, 32], strides = [1, 1]} : vector<8x96xf32> to vector<8x32xf32>
    %433 = vector.extract_strided_slice %423 {offsets = [0, 32], sizes = [8, 32], strides = [1, 1]} : vector<8x96xf32> to vector<8x32xf32>
    %434 = arith.addf %432, %433 : vector<8x32xf32>
    %435 = arith.negf %434 : vector<8x32xf32>
    %436 = math.exp %435 : vector<8x32xf32>
    %cst_83 = arith.constant 1.000000e+00 : f32
    %437 = vector.broadcast %cst_83 : f32 to vector<8x32xf32>
    %438 = arith.addf %437, %436 : vector<8x32xf32>
    %439 = arith.divf %437, %438 : vector<8x32xf32>
    %440 = vector.extract_strided_slice %420 {offsets = [0, 64], sizes = [8, 32], strides = [1, 1]} : vector<8x96xf32> to vector<8x32xf32>
    %441 = vector.extract_strided_slice %423 {offsets = [0, 64], sizes = [8, 32], strides = [1, 1]} : vector<8x96xf32> to vector<8x32xf32>
    %442 = arith.mulf %431, %441 : vector<8x32xf32>
    %443 = arith.addf %440, %442 : vector<8x32xf32>
    %444 = math.tanh %443 : vector<8x32xf32>
    %445 = arith.subf %385, %444 : vector<8x32xf32>
    %446 = arith.mulf %439, %445 : vector<8x32xf32>
    %447 = arith.addf %444, %446 : vector<8x32xf32>
    %448 = arith.index_cast %388 : i32 to index
    %c0_84 = arith.constant 0 : index
    %449 = vector.load %arg7[%448, %c0_84] : memref<64x32xf32, #tpu.memory_space<vmem>>, vector<8x32xf32>
    tpu.vector_store %arg7[%448, %c0_84], %447 {strides = array<i32>} : memref<64x32xf32, #tpu.memory_space<vmem>>, vector<8x32xf32>,
    %c7_i32 = arith.constant 7 : i32
    %c8_i32_85 = arith.constant 8 : i32
    %450 = arith.muli %c7_i32, %c8_i32_85 : i32
    %451 = arith.index_cast %450 : i32 to index
    %c0_86 = arith.constant 0 : index
    %452 = vector.load %arg6[%451, %c0_86] : memref<64x96xf32, #tpu.memory_space<vmem>>, vector<8x96xf32>
    %cst_87 = arith.constant dense<0.000000e+00> : vector<8x96xf32>
    %453 = tpu.matmul %417, %1, %cst_87 {dimension_numbers = #tpu.dot_dimension_numbers<[1], [0], [0], [1], [0, 0, 1, 1], [], []>} : vector<8x32xf32>, vector<32x96xf32>, vector<8x96xf32> -> vector<8x96xf32>
    %454 = vector.broadcast %6 : vector<1x96xf32> to vector<8x96xf32>
    %455 = arith.addf %453, %454 : vector<8x96xf32>
    %456 = vector.extract_strided_slice %452 {offsets = [0, 0], sizes = [8, 32], strides = [1, 1]} : vector<8x96xf32> to vector<8x32xf32>
    %457 = vector.extract_strided_slice %455 {offsets = [0, 0], sizes = [8, 32], strides = [1, 1]} : vector<8x96xf32> to vector<8x32xf32>
    %458 = arith.addf %456, %457 : vector<8x32xf32>
    %459 = arith.negf %458 : vector<8x32xf32>
    %460 = math.exp %459 : vector<8x32xf32>
    %cst_88 = arith.constant 1.000000e+00 : f32
    %461 = vector.broadcast %cst_88 : f32 to vector<8x32xf32>
    %462 = arith.addf %461, %460 : vector<8x32xf32>
    %463 = arith.divf %461, %462 : vector<8x32xf32>
    %464 = vector.extract_strided_slice %452 {offsets = [0, 32], sizes = [8, 32], strides = [1, 1]} : vector<8x96xf32> to vector<8x32xf32>
    %465 = vector.extract_strided_slice %455 {offsets = [0, 32], sizes = [8, 32], strides = [1, 1]} : vector<8x96xf32> to vector<8x32xf32>
    %466 = arith.addf %464, %465 : vector<8x32xf32>
    %467 = arith.negf %466 : vector<8x32xf32>
    %468 = math.exp %467 : vector<8x32xf32>
    %cst_89 = arith.constant 1.000000e+00 : f32
    %469 = vector.broadcast %cst_89 : f32 to vector<8x32xf32>
    %470 = arith.addf %469, %468 : vector<8x32xf32>
    %471 = arith.divf %469, %470 : vector<8x32xf32>
    %472 = vector.extract_strided_slice %452 {offsets = [0, 64], sizes = [8, 32], strides = [1, 1]} : vector<8x96xf32> to vector<8x32xf32>
    %473 = vector.extract_strided_slice %455 {offsets = [0, 64], sizes = [8, 32], strides = [1, 1]} : vector<8x96xf32> to vector<8x32xf32>
    %474 = arith.mulf %463, %473 : vector<8x32xf32>
    %475 = arith.addf %472, %474 : vector<8x32xf32>
    %476 = math.tanh %475 : vector<8x32xf32>
    %477 = arith.subf %417, %476 : vector<8x32xf32>
    %478 = arith.mulf %471, %477 : vector<8x32xf32>
    %479 = arith.addf %476, %478 : vector<8x32xf32>
    %cst_90 = arith.constant dense<0.000000e+00> : vector<8x96xf32>
    %480 = tpu.matmul %479, %2, %cst_90 {dimension_numbers = #tpu.dot_dimension_numbers<[1], [0], [0], [1], [0, 0, 1, 1], [], []>} : vector<8x32xf32>, vector<32x96xf32>, vector<8x96xf32> -> vector<8x96xf32>
    %481 = vector.broadcast %7 : vector<1x96xf32> to vector<8x96xf32>
    %482 = arith.addf %480, %481 : vector<8x96xf32>
    %cst_91 = arith.constant dense<0.000000e+00> : vector<8x96xf32>
    %483 = tpu.matmul %447, %3, %cst_91 {dimension_numbers = #tpu.dot_dimension_numbers<[1], [0], [0], [1], [0, 0, 1, 1], [], []>} : vector<8x32xf32>, vector<32x96xf32>, vector<8x96xf32> -> vector<8x96xf32>
    %484 = vector.broadcast %8 : vector<1x96xf32> to vector<8x96xf32>
    %485 = arith.addf %483, %484 : vector<8x96xf32>
    %486 = vector.extract_strided_slice %482 {offsets = [0, 0], sizes = [8, 32], strides = [1, 1]} : vector<8x96xf32> to vector<8x32xf32>
    %487 = vector.extract_strided_slice %485 {offsets = [0, 0], sizes = [8, 32], strides = [1, 1]} : vector<8x96xf32> to vector<8x32xf32>
    %488 = arith.addf %486, %487 : vector<8x32xf32>
    %489 = arith.negf %488 : vector<8x32xf32>
    %490 = math.exp %489 : vector<8x32xf32>
    %cst_92 = arith.constant 1.000000e+00 : f32
    %491 = vector.broadcast %cst_92 : f32 to vector<8x32xf32>
    %492 = arith.addf %491, %490 : vector<8x32xf32>
    %493 = arith.divf %491, %492 : vector<8x32xf32>
    %494 = vector.extract_strided_slice %482 {offsets = [0, 32], sizes = [8, 32], strides = [1, 1]} : vector<8x96xf32> to vector<8x32xf32>
    %495 = vector.extract_strided_slice %485 {offsets = [0, 32], sizes = [8, 32], strides = [1, 1]} : vector<8x96xf32> to vector<8x32xf32>
    %496 = arith.addf %494, %495 : vector<8x32xf32>
    %497 = arith.negf %496 : vector<8x32xf32>
    %498 = math.exp %497 : vector<8x32xf32>
    %cst_93 = arith.constant 1.000000e+00 : f32
    %499 = vector.broadcast %cst_93 : f32 to vector<8x32xf32>
    %500 = arith.addf %499, %498 : vector<8x32xf32>
    %501 = arith.divf %499, %500 : vector<8x32xf32>
    %502 = vector.extract_strided_slice %482 {offsets = [0, 64], sizes = [8, 32], strides = [1, 1]} : vector<8x96xf32> to vector<8x32xf32>
    %503 = vector.extract_strided_slice %485 {offsets = [0, 64], sizes = [8, 32], strides = [1, 1]} : vector<8x96xf32> to vector<8x32xf32>
    %504 = arith.mulf %493, %503 : vector<8x32xf32>
    %505 = arith.addf %502, %504 : vector<8x32xf32>
    %506 = math.tanh %505 : vector<8x32xf32>
    %507 = arith.subf %447, %506 : vector<8x32xf32>
    %508 = arith.mulf %501, %507 : vector<8x32xf32>
    %509 = arith.addf %506, %508 : vector<8x32xf32>
    %510 = arith.index_cast %450 : i32 to index
    %c0_94 = arith.constant 0 : index
    %511 = vector.load %arg7[%510, %c0_94] : memref<64x32xf32, #tpu.memory_space<vmem>>, vector<8x32xf32>
    tpu.vector_store %arg7[%510, %c0_94], %509 {strides = array<i32>} : memref<64x32xf32, #tpu.memory_space<vmem>>, vector<8x32xf32>,
    %c8_i32_95 = arith.constant 8 : i32
    %c0_96 = arith.constant 0 : index
    %c0_97 = arith.constant 0 : index
    %c0_98 = arith.constant 0 : index
    %512 = vector.load %arg5[%c0_96, %c0_97, %c0_98] : memref<2x8x32xf32, #tpu.memory_space<vmem>>, vector<1x8x32xf32>
    %513 = vector.shape_cast %512 : vector<1x8x32xf32> to vector<8x32xf32>
    %514 = vector.shape_cast %479 : vector<8x32xf32> to vector<1x8x32xf32>
    tpu.vector_store %arg5[%c0_96, %c0_97, %c0_98], %514 {strides = array<i32>} : memref<2x8x32xf32, #tpu.memory_space<vmem>>, vector<1x8x32xf32>,
    %c1_99 = arith.constant 1 : index
    %c0_100 = arith.constant 0 : index
    %c0_101 = arith.constant 0 : index
    %515 = vector.load %arg5[%c1_99, %c0_100, %c0_101] : memref<2x8x32xf32, #tpu.memory_space<vmem>>, vector<1x8x32xf32>
    %516 = vector.shape_cast %515 : vector<1x8x32xf32> to vector<8x32xf32>
    %517 = vector.shape_cast %509 : vector<8x32xf32> to vector<1x8x32xf32>
    tpu.vector_store %arg5[%c1_99, %c0_100, %c0_101], %517 {strides = array<i32>} : memref<2x8x32xf32, #tpu.memory_space<vmem>>, vector<1x8x32xf32>,
    %c0_102 = arith.constant 0 : index
    %c0_103 = arith.constant 0 : index
    %518 = vector.load %arg7[%c0_102, %c0_103] : memref<64x32xf32, #tpu.memory_space<vmem>>, vector<64x32xf32>
    %cst_104 = arith.constant dense<0.000000e+00> : vector<64x128xf32>
    %519 = tpu.matmul %518, %4, %cst_104 {dimension_numbers = #tpu.dot_dimension_numbers<[1], [0], [0], [1], [0, 0, 1, 1], [], []>} : vector<64x32xf32>, vector<32x128xf32>, vector<64x128xf32> -> vector<64x128xf32>
    %520 = vector.broadcast %9 : vector<1x128xf32> to vector<64x128xf32>
    %521 = arith.addf %519, %520 : vector<64x128xf32>
    %522 = vector.shape_cast %521 : vector<64x128xf32> to vector<8x8x128xf32>
    %523 = tpu.iota {dimensions = array<i32: 1>} : vector<8x8x128xi32>
    %c4_i32_105 = arith.constant 4 : i32
    %524 = vector.broadcast %c4_i32_105 : i32 to vector<8x8x128xi32>
    %525 = arith.cmpi slt, %523, %524 : vector<8x8x128xi32>
    %cst_106 = arith.constant -1.000000e+30 : f32
    %526 = vector.broadcast %cst_106 : f32 to vector<8x8x128xf32>
    %527 = arith.select %525, %522, %526 : vector<8x8x128xi1>, vector<8x8x128xf32>
    %cst_107 = arith.constant dense<0xFF800000> : vector<8x128xf32>
    %528 = vector.multi_reduction <maximumf>, %527, %cst_107 [1] : vector<8x8x128xf32> to vector<8x128xf32>
    %529 = vector.shape_cast %528 : vector<8x128xf32> to vector<8x1x128xf32>
    %530 = vector.broadcast %529 : vector<8x1x128xf32> to vector<8x8x128xf32>
    %531 = arith.subf %527, %530 : vector<8x8x128xf32>
    %532 = math.exp %531 : vector<8x8x128xf32>
    %cst_108 = arith.constant dense<0.000000e+00> : vector<8x128xf32>
    %533 = vector.multi_reduction <add>, %532, %cst_108 [1] : vector<8x8x128xf32> to vector<8x128xf32>
    %534 = vector.shape_cast %533 : vector<8x128xf32> to vector<8x1x128xf32>
    %535 = math.log %534 : vector<8x1x128xf32>
    %536 = vector.broadcast %535 : vector<8x1x128xf32> to vector<8x8x128xf32>
    %537 = arith.subf %531, %536 : vector<8x8x128xf32>
    %c0_109 = arith.constant 0 : index
    %c0_110 = arith.constant 0 : index
    %c0_111 = arith.constant 0 : index
    %538 = vector.load %arg4[%c0_109, %c0_110, %c0_111] : memref<8x8x128xf32, #tpu.memory_space<vmem>>, vector<8x8x128xf32>
    tpu.vector_store %arg4[%c0_109, %c0_110, %c0_111], %537 {strides = array<i32>} : memref<8x8x128xf32, #tpu.memory_space<vmem>>, vector<8x8x128xf32>,
    return
  }
  func.func @transform_0(%arg0: i32) -> (i32, i32) {
    %c0_i32 = arith.constant 0 : i32
    %c0_i32_0 = arith.constant 0 : i32
    %c0_i32_1 = arith.constant 0 : i32
    return %c0_i32, %c0_i32_0 : i32, i32
  }
  func.func @transform_1(%arg0: i32) -> (i32, i32) {
    %c0_i32 = arith.constant 0 : i32
    %c0_i32_0 = arith.constant 0 : i32
    %c0_i32_1 = arith.constant 0 : i32
    return %c0_i32, %c0_i32_0 : i32, i32
  }
  func.func @transform_2(%arg0: i32) -> (i32, i32) {
    %c0_i32 = arith.constant 0 : i32
    %c0_i32_0 = arith.constant 0 : i32
    %c0_i32_1 = arith.constant 0 : i32
    return %c0_i32, %c0_i32_0 : i32, i32
  }
  func.func @transform_3(%arg0: i32) -> (i32, i32, i32) {
    %c0_i32 = arith.constant 0 : i32
    %c0_i32_0 = arith.constant 0 : i32
    %c0_i32_1 = arith.constant 0 : i32
    %c0_i32_2 = arith.constant 0 : i32
    return %c0_i32, %c0_i32_0, %c0_i32_1 : i32, i32, i32
  }
  func.func @transform_4(%arg0: i32) -> (i32, i32, i32) {
    %c0_i32 = arith.constant 0 : i32
    %c0_i32_0 = arith.constant 0 : i32
    %c0_i32_1 = arith.constant 0 : i32
    %c0_i32_2 = arith.constant 0 : i32
    return %c0_i32, %c0_i32_0, %c0_i32_1 : i32, i32, i32
  }
}

</mosaic_0001>

<bundles_post_ra>
// kernel: gru_net_forward.1
= control target key start
LH: loop header
LB: loop body
LE: loop exit
PB: predicated region body
PF: predicated region fallthrough
CT: control target
= control target key end

     0   :  { %vm52_vm0 = vcmask 195584   ;;  %v3428_v9 = vmov 0.0   ;;  %vm3429_vm1 = vmmov 0   ;;  %vm182_vm2 = vcmask 785408   ;;  %s3430_s19 = smov 64   ;;  %s3431_s20 = smov 96   ;;  %s4200_s1 = inlined_call_operand.vmem [shape: f32[152,128], index: 1, kind: input, shape index: {}]   ;;  %s4201_s0 = inlined_call_operand.vmem [shape: f32[64,24], index: 0, kind: input, shape index: {}]   ;;  %s4202_s2 = inlined_call_operand.vmem [shape: f32[8,128], index: 2, kind: input, shape index: {}]   ;;  %s4203_s4 = inlined_call_operand.vmem [shape: f32[2,8,32], index: 4, kind: output, shape index: {1}]   ;;  %s4204_s3 = inlined_call_operand.vmem [shape: f32[8,8,128], index: 3, kind: output, shape index: {0}]  }
   0x1   :  { %v18_v0 = vld [vmem:[%s4200_s1 + $0x10] sm:$0xff]  ;;  %v17_v1 = vld [vmem:[%s4200_s1 + $0x8] sm:$0xff]  ;;  %v16_v2 = vld [vmem:[%s4200_s1] sm:$0xff]  ;;  %s3432_s14 = smov 32   ;;  %vm196_vm3 = vcmask 261120  }
   0x2   :  { %2972 = vmatprep.subr.mxu0 %v18_v0  ;;  %3274 = vmatprep.subr.mxu1 %v18_v0  ;;  %v40_v3 = vld [vmem:[%s4201_s0] sm:$0xff]  ;;  %v41_v5 = vld [vmem:[%s4201_s0 + $0x8] sm:$0xff]  ;;  %v46_v7 = vld [vmem:[%s4201_s0 + $0x30] sm:$0xff] }
   0x3   :  { %2973 = vmatpush3.msra.mxu0 %v18_v0  ;;  %3277 = vmatpush3.msra.mxu1 %v18_v0  ;;  %v44_v4 = vld [vmem:[%s4201_s0 + $0x20] sm:$0xff]  ;;  %v45_v6 = vld [vmem:[%s4201_s0 + $0x28] sm:$0xff]  ;;  %v3487_v8 = vld [vmem:[%s4200_s1 + $0x30] sm:$0xff] }
   0x4   :  { %2974 = vmatprep.subr.mxu0 %v17_v1  ;;  %3275 = vmatprep.subr.mxu1 %v17_v1  ;;  %v3496_v10 = vld [vmem:[%s4200_s1 + $0x28] sm:$0xff]  ;;  %v47_v11 = vld [vmem:[%s4201_s0 + $0x38] sm:$0xff]  ;;  %v3507_v12 = vld [vmem:[%s4200_s1 + $0x20] sm:$0xff] }
   0x5   :  { %2975 = vmatpush3.msra.mxu0 %v17_v1  ;;  %3278 = vmatpush3.msra.mxu1 %v17_v1  ;;  %v3515_v13 = vld [vmem:[%s4200_s1 + $0x18] sm:$0xff]  ;;  %v3529_v14 = vld [vmem:[%s4202_s2] ss:$0 sm:$0xff]  ;;  %v3543_v26 = vld [vmem:[%s4202_s2 + $0x1] ss:$0 sm:$0xff] }
   0x6   :  { %2976 = vmatprep.subr.mxu0 %v16_v2  ;;  %3276 = vmatprep.subr.mxu1 %v16_v2  ;;  %v3555_v43 = vld [vmem:[%s4200_s1 + $0x70] sm:$0xff]  ;;  %v3563_v45 = vld [vmem:[%s4200_s1 + $0x68] sm:$0xff]  ;;  %v43_v46 = vld [vmem:[%s4201_s0 + $0x18] sm:$0xff] }
   0x7   :  { %2977 = vmatpush3.msra.mxu0 %v16_v2  ;;  %3279 = vmatpush3.msra.mxu1 %v16_v2  ;;  %v42_v44 = vld [vmem:[%s4201_s0 + $0x10] sm:$0xff]  ;;  %v3575_v47 = vld [vmem:[%s4200_s1 + $0x60] sm:$0xff]  ;;  %v3588_v49 = vld [vmem:[%s4200_s1 + $0x48] sm:$0xff] }
   0x8   :  { %2978 = vmatprep.mubr.msk.f32.mxu0 %vm52_vm0, %v40_v3  ;;  %2984 = vmatprep.mubr.msk.f32.mxu1 %vm52_vm0, %v44_v4  ;;  %v3580_v48 = vld [vmem:[%s4200_s1 + $0x50] sm:$0xff]  ;;  %v3594_v50 = vld [vmem:[%s4200_s1 + $0x58] sm:$0xff]  ;;  %v3602_v51 = vld [vmem:[%s4200_s1 + $0x40] sm:$0xff] }
   0x9   :  { %2979 = vmatmul.mubr.msk.f32.vlgmr.msra.gmra.mxu0 %vm52_vm0, %v41_v5  ;;  %2985 = vmatmul.mubr.msk.f32.vlgmr.msra.gmra.mxu1 %vm52_vm0, %v45_v6  ;;  %v3611_v52 = vld [vmem:[%s4200_s1 + $0x38] sm:$0xff]  ;;  %v3640_v61 = vld [vmem:[%s4202_s2 + $0x3] ss:$0 sm:$0xff]  ;;  %v3670_v2 = vld [vmem:[%s4202_s2 + $0x2] ss:$0 sm:$0xff] }
   0xa   :  { %2990 = vmatprep.subr.mxu1 %v3428_v9  ;;  %2987 = vmatprep.mubr.msk.f32.mxu1 %vm52_vm0, %v46_v7 }
   0xb   :  { %2991 = vmatpush3.msra.mxu1 %v3487_v8  ;;  %3012 = vmatprep.subr.mxu0 %v3428_v9 }
   0xc   :  { %2992 = vmatprep.subr.mxu1 %v3428_v9  ;;  %3013 = vmatpush3.msra.mxu0 %v3555_v43 }
   0xd   :  { %2993 = vmatpush3.msra.mxu1 %v3496_v10  ;;  %2981 = vmatprep.mubr.msk.f32.mxu0 %vm52_vm0, %v42_v44 }
   0xe   :  { %2988 = vmatmul.mubr.msk.f32.gmra.mxu1 %vm52_vm0, %v47_v11  ;;  %2994 = vmatprep.subr.mxu1 %v3428_v9 }
   0xf   :  { %2995 = vmatpush3.msra.mxu1 %v3507_v12  ;;  %2998 = vmatprep.mubr.msk.f32.mxu1 %vm3429_vm1, %v3428_v9 }
  0x10   :  { %2996 = vmatprep.subr.mxu1 %v3428_v9  ;;  %3014 = vmatprep.subr.mxu0 %v3428_v9 }
  0x11   :  { %2997 = vmatpush3.msra.mxu1 %v3515_v13  ;;  %2982 = vmatmul.mubr.msk.f32.gmra.mxu0 %vm52_vm0, %v43_v46 }
  0x12   :  { %2999 = vmatmul.mubr.f32.vlgmr.msra.gmra.mxu1 %v3428_v9  ;;  %3001 = vmatprep.subr.mxu1 %v3428_v9 }
  0x13   :  { %3009 = vmatprep.mubr.msk.f32.mxu1 %vm3429_vm1, %v3428_v9  ;;  %3015 = vmatpush3.msra.mxu0 %v3563_v45 }
  0x14   :  { %3020 = vmatprep.mubr.msk.f32.mxu0 %vm3429_vm1, %v3428_v9  ;;  %3016 = vmatprep.subr.mxu0 %v3428_v9 }
  0x15   :  { %3002 = vmatpush3.msra.mxu1 %v3580_v48  ;;  %3017 = vmatpush3.msra.mxu0 %v3575_v47 }
  0x16   :  { %3003 = vmatprep.subr.mxu1 %v3428_v9  ;;  %3018 = vmatprep.subr.mxu0 %v3428_v9 }
  0x17   :  { %3004 = vmatpush3.msra.mxu1 %v3588_v49  ;;  %3019 = vmatpush3.msra.mxu0 %v3594_v50 }
  0x18   :  { %3005 = vmatprep.subr.mxu1 %v3428_v9  ;;  %3021 = vmatmul.mubr.f32.vlgmr.msra.gmra.mxu0 %v3428_v9 }
  0x19   :  { %3006 = vmatpush3.msra.mxu1 %v3602_v51  ;;  %3034 = vmatprep.subr.mxu0 %v3428_v9 }
  0x1a   :  { %3007 = vmatprep.subr.mxu1 %v3428_v9  ;;  %3035 = vmatpush3.msra.mxu0 %v3580_v48 }
  0x1b   :  { %3008 = vmatpush3.msra.mxu1 %v3611_v52  ;;  %3036 = vmatprep.subr.mxu0 %v3428_v9 }
  0x1c   :  { %3023 = vmatprep.subr.mxu1 %v3428_v9  ;;  %3042 = vmatprep.mubr.msk.f32.mxu0 %vm3429_vm1, %v3428_v9 }
  0x1d   :  { %3037 = vmatpush3.msra.mxu0 %v3588_v49 }
  0x1e   :  { %3038 = vmatprep.subr.mxu0 %v3428_v9 }
  0x1f   :  { %3039 = vmatpush3.msra.mxu0 %v3602_v51 }
  0x20   :  { %3040 = vmatprep.subr.mxu0 %v3428_v9 }
  0x21   :  { %3041 = vmatpush3.msra.mxu0 %v3611_v52 }
  0x22   :  { %3056 = vmatprep.subr.mxu0 %v3428_v9 }
  0xc9   :  { %v2980_v15 = vpop.f32.mrf.mxu0  ;;  %v2986_v16 = vpop.f32.mrf.mxu1 }
  0xca   :  { %v149_v17 = vadd.f32 %v2980_v15, %v3529_v14  ;;  %v169_v18 = vadd.f32 %v2986_v16, %v3529_v14 }
  0xcb   :  { %v143_v19 = vpop.f32.mrf.mxu0  ;;  %v163_v20 = vpop.f32.mrf.mxu1 }
  0xcc   :  { %184 = vst.msk [vmem:[#allocation2 + $0x8] sm:$0xff] %vm182_vm2, %v149_v17  ;;  %188 = vst.msk [vmem:[#allocation2 + $0x28] sm:$0xff] %vm182_vm2, %v169_v18  ;;  %v144_v21 = vadd.f32 %v3529_v14, %v143_v19  ;;  %v164_v22 = vadd.f32 %v3529_v14, %v163_v20 }
  0xce   :  { %183 = vst.msk [vmem:[#allocation2] sm:$0xff] %vm182_vm2, %v144_v21  ;;  %187 = vst.msk [vmem:[#allocation2 + $0x20] sm:$0xff] %vm182_vm2, %v164_v22  ;;  %v2989_v23 = vpop.f32.mrf.mxu1 }
  0xcf   :  { %v179_v24 = vadd.f32 %v2989_v23, %v3529_v14 }
  0xd0   :  { %v173_v25 = vpop.f32.mrf.mxu1 }
  0xd1   :  { %190 = vst.msk [vmem:[#allocation2 + $0x38] sm:$0xff] %vm182_vm2, %v179_v24  ;;  %v174_v27 = vadd.f32 %v3529_v14, %v173_v25  ;;  %v2983_v57 = vpop.f32.mrf.mxu0 }
  0xd2   :  { %v266_v28 = vpop.f32.mrf.mxu1  ;;  %v159_v58 = vadd.f32 %v2983_v57, %v3529_v14 }
  0xd3   :  { %189 = vst.msk [vmem:[#allocation2 + $0x30] sm:$0xff] %vm182_vm2, %v174_v27  ;;  %v267_v29 = vadd.f32 %v3543_v26, %v266_v28  ;;  %v153_v59 = vpop.f32.mrf.mxu0  ;;  %v486_v21 = vld [vmem:[#allocation2 + $0x8] sm:$0xff] }
  0xd4   :  { %v3000_v30 = vpop.f32.mrf.mxu1  ;;  %186 = vst.msk [vmem:[#allocation2 + $0x18] sm:$0xff] %vm182_vm2, %v159_v58  ;;  %v154_v60 = vadd.f32 %v3529_v14, %v153_v59 }
  0xd5   :  { %278 = vrot.lane.b32.xlu0 %v267_v29, %s3430_s19  ;;  %v191_v31 = vld [vmem:[#allocation2] sm:$0xff] }
  0xd6   :  { %v270_v32 = vadd.f32 %v267_v29, %v191_v31  ;;  %185 = vst.msk [vmem:[#allocation2 + $0x10] sm:$0xff] %vm182_vm2, %v154_v60 }
  0xd8   :  { %v2779_v33 = vmul.f32 -1.442695, %v270_v32  ;;  %v448_v62 = vpop.f32.mrf.mxu0 }
  0xd9   :  { %v449_v63 = vadd.f32 %v3640_v61, %v448_v62 }
  0xda   :  { %3285 = vpow2.f32 %v2779_v33  ;;  %v3022_v0 = vpop.f32.mrf.mxu0 }
  0xe7   :  { %v3286_v34 = vpop.eup %3285 }
  0xe8   :  { %v274_v35 = vadd.f32 1.0, %v3286_v34 }
  0xea   :  { %3287 = vrcp.f32 %v274_v35 }
  0xf7   :  { %v3288_v36 = vpop.eup %3287 }
 0x147   :  { %v279_v37 = vpop.permute.xlu0 %278 }
 0x148   :  { %v281_v38 = vmul.f32 %v3288_v36, %v279_v37 }
 0x14a   :  { %283 = vrot.lane.b32.xlu0 %v281_v38, %s3430_s19 }
 0x1bc   :  { %v284_v39 = vpop.permute.xlu0 %283 }
 0x1bd   :  { %v286_v40 = vadd.f32 %v284_v39, %v191_v31 }
 0x1bf   :  { %3289 = vtanh.f32 %v286_v40 }
 0x1cc   :  { %v3290_v41 = vpop.eup %3289 }
 0x1cd   :  { %v288_v42 = vsub.f32 0.0, %v3290_v41 }
 0x1cf   :  { %290 = vrot.lane.b32.xlu1 %v288_v42, %s3431_s20 }
 0x241   :  { %v291_v53 = vpop.permute.xlu1 %290 }
 0x242   :  { %v293_v54 = vmul.f32 %v3288_v36, %v291_v53 }
 0x244   :  { %295 = vrot.lane.b32.xlu1 %v293_v54, %s3432_s14 }
 0x2b6   :  { %v296_v55 = vpop.permute.xlu1 %295 }
 0x2b7   :  { %v3630_v56 = vadd.f32 %v3290_v41, %v296_v55 }
 0x2b9   :  { %304 = vrot.lane.b32.xlu0 %v3630_v56, %s3430_s19 }
 0x2bd   :  { %460 = vrot.lane.b32.xlu0 %v449_v63, %s3430_s19 }
 0x32b   :  { %v305_v1 = vpop.permute.xlu0 %304 }
 0x32c   :  { %3010 = vmatmul.mubr.msk.f32.vlgmr.msra.gmra.mxu1 %vm196_vm3, %v305_v1 }
 0x32d   :  { %3024 = vmatpush3.msra.mxu1 %v3487_v8  ;;  %3031 = vmatprep.mubr.msk.f32.mxu1 %vm3429_vm1, %v3428_v9 }
 0x32e   :  { %3025 = vmatprep.subr.mxu1 %v3428_v9 }
 0x32f   :  { %3026 = vmatpush3.msra.mxu1 %v3496_v10  ;;  %v461_v18 = vpop.permute.xlu0 %460 }
 0x330   :  { %3027 = vmatprep.subr.mxu1 %v3428_v9 }
 0x331   :  { %3028 = vmatpush3.msra.mxu1 %v3507_v12 }
 0x332   :  { %3029 = vmatprep.subr.mxu1 %v3428_v9 }
 0x333   :  { %3030 = vmatpush3.msra.mxu1 %v3515_v13 }
 0x334   :  { %3032 = vmatmul.mubr.msk.f32.vlgmr.msra.gmra.mxu1 %vm196_vm3, %v305_v1  ;;  %3045 = vmatprep.subr.mxu1 %v3428_v9 }
 0x335   :  { %3046 = vmatpush3.msra.mxu1 %v3555_v43  ;;  %3053 = vmatprep.mubr.msk.f32.mxu1 %vm3429_vm1, %v3428_v9 }
 0x336   :  { %3047 = vmatprep.subr.mxu1 %v3428_v9 }
 0x337   :  { %3048 = vmatpush3.msra.mxu1 %v3563_v45 }
 0x338   :  { %3049 = vmatprep.subr.mxu1 %v3428_v9 }
 0x339   :  { %3050 = vmatpush3.msra.mxu1 %v3575_v47 }
 0x33a   :  { %3051 = vmatprep.subr.mxu1 %v3428_v9 }
 0x33b   :  { %3052 = vmatpush3.msra.mxu1 %v3594_v50 }
 0x33c   :  { %3067 = vmatprep.subr.mxu1 %v3428_v9 }
 0x3ec   :  { %v374_v3 = vpop.f32.mrf.mxu1 }
 0x3ed   :  { %v375_v4 = vadd.f32 %v3670_v2, %v374_v3 }
 0x3ee   :  { %v3011_v5 = vpop.f32.mrf.mxu1 }
 0x3ef   :  { %v452_v6 = vadd.f32 %v449_v63, %v375_v4 }
 0x3f1   :  { %v2783_v7 = vmul.f32 -1.442695, %v452_v6 }
 0x3f3   :  { %3291 = vpow2.f32 %v2783_v7 }
 0x3f4   :  { %v553_v11 = vpop.f32.mrf.mxu1 }
 0x3f5   :  { %v554_v14 = vadd.f32 %v3543_v26, %v553_v11 }
 0x3f6   :  { %v3033_v15 = vpop.f32.mrf.mxu1 }
 0x3f7   :  { %565 = vrot.lane.b32.xlu1 %v554_v14, %s3430_s19  ;;  %v557_v22 = vadd.f32 %v554_v14, %v486_v21  ;;  %v767_v15 = vld [vmem:[#allocation2 + $0x10] sm:$0xff] }
 0x3f9   :  { %v2785_v23 = vmul.f32 -1.442695, %v557_v22 }
 0x400   :  { %v3292_v16 = vpop.eup %3291 }
 0x401   :  { %v456_v17 = vadd.f32 1.0, %v3292_v16 }
 0x403   :  { %3293 = vrcp.f32 %v456_v17 }
 0x404   :  { %3295 = vpow2.f32 %v2785_v23 }
 0x410   :  { %v3294_v19 = vpop.eup %3293 }
 0x411   :  { %v463_v20 = vmul.f32 %v3294_v19, %v461_v18  ;;  %v3296_v24 = vpop.eup %3295 }
 0x412   :  { %v561_v25 = vadd.f32 1.0, %v3296_v24 }
 0x413   :  { %465 = vrot.lane.b32.xlu0 %v463_v20, %s3430_s19 }
 0x414   :  { %3297 = vrcp.f32 %v561_v25 }
 0x421   :  { %v3298_v27 = vpop.eup %3297 }
 0x469   :  { %v566_v28 = vpop.permute.xlu1 %565 }
 0x46a   :  { %v568_v29 = vmul.f32 %v3298_v27, %v566_v28 }
 0x46c   :  { %570 = vrot.lane.b32.xlu1 %v568_v29, %s3430_s19 }
 0x485   :  { %v466_v30 = vpop.permute.xlu0 %465 }
 0x486   :  { %v468_v31 = vadd.f32 %v466_v30, %v375_v4 }
 0x488   :  { %3299 = vtanh.f32 %v468_v31 }
 0x495   :  { %v3300_v32 = vpop.eup %3299 }
 0x496   :  { %v470_v33 = vsub.f32 0.0, %v3300_v32 }
 0x498   :  { %472 = vrot.lane.b32.xlu0 %v470_v33, %s3431_s20 }
 0x4de   :  { %v571_v34 = vpop.permute.xlu1 %570 }
 0x4df   :  { %v573_v35 = vadd.f32 %v571_v34, %v486_v21 }
 0x4e1   :  { %3301 = vtanh.f32 %v573_v35 }
 0x4ee   :  { %v3302_v36 = vpop.eup %3301 }
 0x4ef   :  { %v575_v37 = vsub.f32 %v3630_v56, %v3302_v36 }
 0x4f1   :  { %577 = vrot.lane.b32.xlu1 %v575_v37, %s3431_s20 }
 0x50a   :  { %v473_v38 = vpop.permute.xlu0 %472 }
 0x50b   :  { %v475_v39 = vmul.f32 %v3294_v19, %v473_v38 }
 0x50d   :  { %477 = vrot.lane.b32.xlu0 %v475_v39, %s3432_s14 }
 0x563   :  { %v578_v40 = vpop.permute.xlu1 %577 }
 0x564   :  { %v580_v41 = vmul.f32 %v3298_v27, %v578_v40 }
 0x566   :  { %582 = vrot.lane.b32.xlu1 %v580_v41, %s3432_s14 }
 0x57f   :  { %v478_v42 = vpop.permute.xlu0 %477 }
 0x580   :  { %v3682_v44 = vadd.f32 %v3300_v32, %v478_v42 }
 0x582   :  { %482 = vrot.lane.b32.xlu0 %v3682_v44, %s3430_s19 }
 0x5d8   :  { %v583_v46 = vpop.permute.xlu1 %582 }
 0x5d9   :  { %v3686_v53 = vadd.f32 %v3302_v36, %v583_v46 }
 0x5db   :  { %587 = vrot.lane.b32.xlu1 %v3686_v53, %s3430_s19 }
 0x5f4   :  { %v483_v54 = vpop.permute.xlu0 %482 }
 0x5f5   :  { %485 = vst.msk [vmem:[#allocation3] sm:$0xff] %vm196_vm3, %v483_v54  ;;  %3054 = vmatmul.mubr.msk.f32.vlgmr.msra.gmra.mxu1 %vm196_vm3, %v483_v54 }
 0x5f6   :  { %3068 = vmatpush3.msra.mxu1 %v3580_v48  ;;  %3075 = vmatprep.mubr.msk.f32.mxu1 %vm3429_vm1, %v3428_v9 }
 0x5f7   :  { %3069 = vmatprep.subr.mxu1 %v3428_v9 }
 0x5f8   :  { %3070 = vmatpush3.msra.mxu1 %v3588_v49 }
 0x5f9   :  { %3071 = vmatprep.subr.mxu1 %v3428_v9 }
 0x5fa   :  { %3072 = vmatpush3.msra.mxu1 %v3602_v51 }
 0x5fb   :  { %3073 = vmatprep.subr.mxu1 %v3428_v9 }
 0x5fc   :  { %3074 = vmatpush3.msra.mxu1 %v3611_v52 }
 0x5fd   :  { %3089 = vmatprep.subr.mxu1 %v3428_v9 }
 0x64d   :  { %v588_v55 = vpop.permute.xlu1 %587 }
 0x64e   :  { %3043 = vmatmul.mubr.msk.f32.vlgmr.msra.gmra.mxu0 %vm196_vm3, %v588_v55 }
 0x64f   :  { %3057 = vmatpush3.msra.mxu0 %v3487_v8  ;;  %3064 = vmatprep.mubr.msk.f32.mxu0 %vm3429_vm1, %v3428_v9 }
 0x650   :  { %3058 = vmatprep.subr.mxu0 %v3428_v9 }
 0x651   :  { %3059 = vmatpush3.msra.mxu0 %v3496_v10 }
 0x652   :  { %3060 = vmatprep.subr.mxu0 %v3428_v9 }
 0x653   :  { %3061 = vmatpush3.msra.mxu0 %v3507_v12 }
 0x654   :  { %3062 = vmatprep.subr.mxu0 %v3428_v9 }
 0x655   :  { %3063 = vmatpush3.msra.mxu0 %v3515_v13 }
 0x656   :  { %3065 = vmatmul.mubr.msk.f32.vlgmr.msra.gmra.mxu0 %vm196_vm3, %v588_v55  ;;  %3078 = vmatprep.subr.mxu0 %v3428_v9 }
 0x657   :  { %3079 = vmatpush3.msra.mxu0 %v3555_v43  ;;  %3086 = vmatprep.mubr.msk.f32.mxu0 %vm3429_vm1, %v3428_v9 }
 0x658   :  { %3080 = vmatprep.subr.mxu0 %v3428_v9 }
 0x659   :  { %3081 = vmatpush3.msra.mxu0 %v3563_v45 }
 0x65a   :  { %3082 = vmatprep.subr.mxu0 %v3428_v9 }
 0x65b   :  { %3083 = vmatpush3.msra.mxu0 %v3575_v47 }
 0x65c   :  { %3084 = vmatprep.subr.mxu0 %v3428_v9 }
 0x65d   :  { %3085 = vmatpush3.msra.mxu0 %v3594_v50 }
 0x65e   :  { %3100 = vmatprep.subr.mxu0 %v3428_v9 }
 0x6b5   :  { %v729_v56 = vpop.f32.mrf.mxu1 }
 0x6b6   :  { %v730_v57 = vadd.f32 %v3640_v61, %v729_v56 }
 0x6b7   :  { %v3055_v58 = vpop.f32.mrf.mxu1 }
 0x6b8   :  { %741 = vrot.lane.b32.xlu0 %v730_v57, %s3430_s19 }
 0x70e   :  { %v657_v59 = vpop.f32.mrf.mxu0 }
 0x70f   :  { %v658_v60 = vadd.f32 %v3670_v2, %v657_v59 }
 0x710   :  { %v3044_v62 = vpop.f32.mrf.mxu0 }
 0x711   :  { %v733_v63 = vadd.f32 %v730_v57, %v658_v60 }
 0x713   :  { %v2788_v0 = vmul.f32 -1.442695, %v733_v63 }
 0x715   :  { %3303 = vpow2.f32 %v2788_v0 }
 0x716   :  { %v834_v1 = vpop.f32.mrf.mxu0 }
 0x717   :  { %v835_v3 = vadd.f32 %v3543_v26, %v834_v1 }
 0x718   :  { %v3066_v4 = vpop.f32.mrf.mxu0 }
 0x719   :  { %846 = vrot.lane.b32.xlu1 %v835_v3, %s3430_s19  ;;  %v838_v16 = vadd.f32 %v835_v3, %v767_v15  ;;  %v1048_v4 = vld [vmem:[#allocation2 + $0x18] sm:$0xff] }
 0x71b   :  { %v2790_v17 = vmul.f32 -1.442695, %v838_v16 }
 0x722   :  { %v3304_v5 = vpop.eup %3303 }
 0x723   :  { %v737_v6 = vadd.f32 1.0, %v3304_v5 }
 0x725   :  { %3305 = vrcp.f32 %v737_v6 }
 0x726   :  { %3307 = vpow2.f32 %v2790_v17 }
 0x72a   :  { %v742_v11 = vpop.permute.xlu0 %741 }
 0x732   :  { %v3306_v7 = vpop.eup %3305 }
 0x733   :  { %v744_v14 = vmul.f32 %v3306_v7, %v742_v11  ;;  %v3308_v18 = vpop.eup %3307 }
 0x734   :  { %v842_v19 = vadd.f32 1.0, %v3308_v18 }
 0x735   :  { %746 = vrot.lane.b32.xlu0 %v744_v14, %s3430_s19 }
 0x736   :  { %3309 = vrcp.f32 %v842_v19 }
 0x743   :  { %v3310_v20 = vpop.eup %3309 }
 0x78b   :  { %v847_v21 = vpop.permute.xlu1 %846 }
 0x78c   :  { %v849_v22 = vmul.f32 %v3310_v20, %v847_v21 }
 0x78e   :  { %851 = vrot.lane.b32.xlu1 %v849_v22, %s3430_s19 }
 0x7a7   :  { %v747_v23 = vpop.permute.xlu0 %746 }
 0x7a8   :  { %v749_v24 = vadd.f32 %v747_v23, %v658_v60 }
 0x7aa   :  { %3311 = vtanh.f32 %v749_v24 }
 0x7b7   :  { %v3312_v25 = vpop.eup %3311 }
 0x7b8   :  { %v751_v27 = vsub.f32 %v3682_v44, %v3312_v25 }
 0x7ba   :  { %753 = vrot.lane.b32.xlu0 %v751_v27, %s3431_s20 }
 0x800   :  { %v852_v28 = vpop.permute.xlu1 %851 }
 0x801   :  { %v854_v29 = vadd.f32 %v852_v28, %v767_v15 }
 0x803   :  { %3313 = vtanh.f32 %v854_v29 }
 0x810   :  { %v3314_v30 = vpop.eup %3313 }
 0x811   :  { %v856_v31 = vsub.f32 %v3686_v53, %v3314_v30 }
 0x813   :  { %858 = vrot.lane.b32.xlu1 %v856_v31, %s3431_s20 }
 0x82c   :  { %v754_v32 = vpop.permute.xlu0 %753 }
 0x82d   :  { %v756_v33 = vmul.f32 %v3306_v7, %v754_v32 }
 0x82f   :  { %758 = vrot.lane.b32.xlu0 %v756_v33, %s3432_s14 }
 0x885   :  { %v859_v34 = vpop.permute.xlu1 %858 }
 0x886   :  { %v861_v35 = vmul.f32 %v3310_v20, %v859_v34 }
 0x888   :  { %863 = vrot.lane.b32.xlu1 %v861_v35, %s3432_s14 }
 0x8a1   :  { %v759_v36 = vpop.permute.xlu0 %758 }
 0x8a2   :  { %v3737_v37 = vadd.f32 %v3312_v25, %v759_v36 }
 0x8a4   :  { %763 = vrot.lane.b32.xlu0 %v3737_v37, %s3430_s19 }
 0x8fa   :  { %v864_v38 = vpop.permute.xlu1 %863 }
 0x8fb   :  { %v3741_v39 = vadd.f32 %v3314_v30, %v864_v38 }
 0x8fd   :  { %868 = vrot.lane.b32.xlu1 %v3741_v39, %s3430_s19 }
 0x916   :  { %v764_v40 = vpop.permute.xlu0 %763 }
 0x917   :  { %766 = vst.msk [vmem:[#allocation3 + $0x8] sm:$0xff] %vm196_vm3, %v764_v40  ;;  %3087 = vmatmul.mubr.msk.f32.vlgmr.msra.gmra.mxu0 %vm196_vm3, %v764_v40 }
 0x918   :  { %3101 = vmatpush3.msra.mxu0 %v3580_v48  ;;  %3108 = vmatprep.mubr.msk.f32.mxu0 %vm3429_vm1, %v3428_v9 }
 0x919   :  { %3102 = vmatprep.subr.mxu0 %v3428_v9 }
 0x91a   :  { %3103 = vmatpush3.msra.mxu0 %v3588_v49 }
 0x91b   :  { %3104 = vmatprep.subr.mxu0 %v3428_v9 }
 0x91c   :  { %3105 = vmatpush3.msra.mxu0 %v3602_v51 }
 0x91d   :  { %3106 = vmatprep.subr.mxu0 %v3428_v9 }
 0x91e   :  { %3107 = vmatpush3.msra.mxu0 %v3611_v52 }
 0x91f   :  { %3122 = vmatprep.subr.mxu0 %v3428_v9 }
 0x96f   :  { %v869_v41 = vpop.permute.xlu1 %868 }
 0x970   :  { %3076 = vmatmul.mubr.msk.f32.vlgmr.msra.gmra.mxu1 %vm196_vm3, %v869_v41 }
 0x971   :  { %3090 = vmatpush3.msra.mxu1 %v3487_v8  ;;  %3097 = vmatprep.mubr.msk.f32.mxu1 %vm3429_vm1, %v3428_v9 }
 0x972   :  { %3091 = vmatprep.subr.mxu1 %v3428_v9 }
 0x973   :  { %3092 = vmatpush3.msra.mxu1 %v3496_v10 }
 0x974   :  { %3093 = vmatprep.subr.mxu1 %v3428_v9 }
 0x975   :  { %3094 = vmatpush3.msra.mxu1 %v3507_v12 }
 0x976   :  { %3095 = vmatprep.subr.mxu1 %v3428_v9 }
 0x977   :  { %3096 = vmatpush3.msra.mxu1 %v3515_v13 }
 0x978   :  { %3098 = vmatmul.mubr.msk.f32.vlgmr.msra.gmra.mxu1 %vm196_vm3, %v869_v41  ;;  %3111 = vmatprep.subr.mxu1 %v3428_v9 }
 0x979   :  { %3112 = vmatpush3.msra.mxu1 %v3555_v43  ;;  %3119 = vmatprep.mubr.msk.f32.mxu1 %vm3429_vm1, %v3428_v9 }
 0x97a   :  { %3113 = vmatprep.subr.mxu1 %v3428_v9 }
 0x97b   :  { %3114 = vmatpush3.msra.mxu1 %v3563_v45 }
 0x97c   :  { %3115 = vmatprep.subr.mxu1 %v3428_v9 }
 0x97d   :  { %3116 = vmatpush3.msra.mxu1 %v3575_v47 }
 0x97e   :  { %3117 = vmatprep.subr.mxu1 %v3428_v9 }
 0x97f   :  { %3118 = vmatpush3.msra.mxu1 %v3594_v50 }
 0x980   :  { %3133 = vmatprep.subr.mxu1 %v3428_v9 }
 0x9d7   :  { %v1010_v42 = vpop.f32.mrf.mxu0 }
 0x9d8   :  { %v1011_v44 = vadd.f32 %v3640_v61, %v1010_v42 }
 0x9d9   :  { %v3088_v46 = vpop.f32.mrf.mxu0 }
 0x9da   :  { %1022 = vrot.lane.b32.xlu0 %v1011_v44, %s3430_s19 }
 0xa30   :  { %v938_v53 = vpop.f32.mrf.mxu1 }
 0xa31   :  { %v939_v54 = vadd.f32 %v3670_v2, %v938_v53 }
 0xa32   :  { %v3077_v55 = vpop.f32.mrf.mxu1 }
 0xa33   :  { %v1014_v56 = vadd.f32 %v1011_v44, %v939_v54 }
 0xa35   :  { %v2793_v57 = vmul.f32 -1.442695, %v1014_v56 }
 0xa37   :  { %3315 = vpow2.f32 %v2793_v57 }
 0xa38   :  { %v1115_v58 = vpop.f32.mrf.mxu1 }
 0xa39   :  { %v1116_v59 = vadd.f32 %v3543_v26, %v1115_v58 }
 0xa3a   :  { %v3099_v60 = vpop.f32.mrf.mxu1 }
 0xa3b   :  { %1127 = vrot.lane.b32.xlu1 %v1116_v59, %s3430_s19  ;;  %v1119_v5 = vadd.f32 %v1116_v59, %v1048_v4  ;;  %v1329_v60 = vld [vmem:[#allocation2 + $0x20] sm:$0xff] }
 0xa3d   :  { %v2795_v6 = vmul.f32 -1.442695, %v1119_v5 }
 0xa44   :  { %v3316_v62 = vpop.eup %3315 }
 0xa45   :  { %v1018_v63 = vadd.f32 1.0, %v3316_v62 }
 0xa47   :  { %3317 = vrcp.f32 %v1018_v63 }
 0xa48   :  { %3319 = vpow2.f32 %v2795_v6 }
 0xa4c   :  { %v1023_v1 = vpop.permute.xlu0 %1022 }
 0xa54   :  { %v3318_v0 = vpop.eup %3317 }
 0xa55   :  { %v1025_v3 = vmul.f32 %v3318_v0, %v1023_v1  ;;  %v3320_v7 = vpop.eup %3319 }
 0xa56   :  { %v1123_v11 = vadd.f32 1.0, %v3320_v7 }
 0xa57   :  { %1027 = vrot.lane.b32.xlu0 %v1025_v3, %s3430_s19 }
 0xa58   :  { %3321 = vrcp.f32 %v1123_v11 }
 0xa65   :  { %v3322_v14 = vpop.eup %3321 }
 0xaad   :  { %v1128_v15 = vpop.permute.xlu1 %1127 }
 0xaae   :  { %v1130_v16 = vmul.f32 %v3322_v14, %v1128_v15 }
 0xab0   :  { %1132 = vrot.lane.b32.xlu1 %v1130_v16, %s3430_s19 }
 0xac9   :  { %v1028_v17 = vpop.permute.xlu0 %1027 }
 0xaca   :  { %v1030_v18 = vadd.f32 %v1028_v17, %v939_v54 }
 0xacc   :  { %3323 = vtanh.f32 %v1030_v18 }
 0xad9   :  { %v3324_v19 = vpop.eup %3323 }
 0xada   :  { %v1032_v20 = vsub.f32 %v3737_v37, %v3324_v19 }
 0xadc   :  { %1034 = vrot.lane.b32.xlu0 %v1032_v20, %s3431_s20 }
 0xb22   :  { %v1133_v21 = vpop.permute.xlu1 %1132 }
 0xb23   :  { %v1135_v22 = vadd.f32 %v1133_v21, %v1048_v4 }
 0xb25   :  { %3325 = vtanh.f32 %v1135_v22 }
 0xb32   :  { %v3326_v23 = vpop.eup %3325 }
 0xb33   :  { %v1137_v24 = vsub.f32 %v3741_v39, %v3326_v23 }
 0xb35   :  { %1139 = vrot.lane.b32.xlu1 %v1137_v24, %s3431_s20 }
 0xb4e   :  { %v1035_v25 = vpop.permute.xlu0 %1034 }
 0xb4f   :  { %v1037_v27 = vmul.f32 %v3318_v0, %v1035_v25 }
 0xb51   :  { %1039 = vrot.lane.b32.xlu0 %v1037_v27, %s3432_s14 }
 0xba7   :  { %v1140_v28 = vpop.permute.xlu1 %1139 }
 0xba8   :  { %v1142_v29 = vmul.f32 %v3322_v14, %v1140_v28 }
 0xbaa   :  { %1144 = vrot.lane.b32.xlu1 %v1142_v29, %s3432_s14 }
 0xbc3   :  { %v1040_v30 = vpop.permute.xlu0 %1039 }
 0xbc4   :  { %v3792_v31 = vadd.f32 %v3324_v19, %v1040_v30 }
 0xbc6   :  { %1044 = vrot.lane.b32.xlu0 %v3792_v31, %s3430_s19 }
 0xc1c   :  { %v1145_v32 = vpop.permute.xlu1 %1144 }
 0xc1d   :  { %v3796_v33 = vadd.f32 %v3326_v23, %v1145_v32 }
 0xc1f   :  { %1149 = vrot.lane.b32.xlu1 %v3796_v33, %s3430_s19 }
 0xc38   :  { %v1045_v34 = vpop.permute.xlu0 %1044 }
 0xc39   :  { %1047 = vst.msk [vmem:[#allocation3 + $0x10] sm:$0xff] %vm196_vm3, %v1045_v34  ;;  %3120 = vmatmul.mubr.msk.f32.vlgmr.msra.gmra.mxu1 %vm196_vm3, %v1045_v34 }
 0xc3a   :  { %3134 = vmatpush3.msra.mxu1 %v3580_v48  ;;  %3141 = vmatprep.mubr.msk.f32.mxu1 %vm3429_vm1, %v3428_v9 }
 0xc3b   :  { %3135 = vmatprep.subr.mxu1 %v3428_v9 }
 0xc3c   :  { %3136 = vmatpush3.msra.mxu1 %v3588_v49 }
 0xc3d   :  { %3137 = vmatprep.subr.mxu1 %v3428_v9 }
 0xc3e   :  { %3138 = vmatpush3.msra.mxu1 %v3602_v51 }
 0xc3f   :  { %3139 = vmatprep.subr.mxu1 %v3428_v9 }
 0xc40   :  { %3140 = vmatpush3.msra.mxu1 %v3611_v52 }
 0xc41   :  { %3155 = vmatprep.subr.mxu1 %v3428_v9 }
 0xc91   :  { %v1150_v35 = vpop.permute.xlu1 %1149 }
 0xc92   :  { %3109 = vmatmul.mubr.msk.f32.vlgmr.msra.gmra.mxu0 %vm196_vm3, %v1150_v35 }
 0xc93   :  { %3123 = vmatpush3.msra.mxu0 %v3487_v8  ;;  %3130 = vmatprep.mubr.msk.f32.mxu0 %vm3429_vm1, %v3428_v9 }
 0xc94   :  { %3124 = vmatprep.subr.mxu0 %v3428_v9 }
 0xc95   :  { %3125 = vmatpush3.msra.mxu0 %v3496_v10 }
 0xc96   :  { %3126 = vmatprep.subr.mxu0 %v3428_v9 }
 0xc97   :  { %3127 = vmatpush3.msra.mxu0 %v3507_v12 }
 0xc98   :  { %3128 = vmatprep.subr.mxu0 %v3428_v9 }
 0xc99   :  { %3129 = vmatpush3.msra.mxu0 %v3515_v13 }
 0xc9a   :  { %3131 = vmatmul.mubr.msk.f32.vlgmr.msra.gmra.mxu0 %vm196_vm3, %v1150_v35  ;;  %3144 = vmatprep.subr.mxu0 %v3428_v9 }
 0xc9b   :  { %3145 = vmatpush3.msra.mxu0 %v3555_v43  ;;  %3152 = vmatprep.mubr.msk.f32.mxu0 %vm3429_vm1, %v3428_v9 }
 0xc9c   :  { %3146 = vmatprep.subr.mxu0 %v3428_v9 }
 0xc9d   :  { %3147 = vmatpush3.msra.mxu0 %v3563_v45 }
 0xc9e   :  { %3148 = vmatprep.subr.mxu0 %v3428_v9 }
 0xc9f   :  { %3149 = vmatpush3.msra.mxu0 %v3575_v47 }
 0xca0   :  { %3150 = vmatprep.subr.mxu0 %v3428_v9 }
 0xca1   :  { %3151 = vmatpush3.msra.mxu0 %v3594_v50 }
 0xca2   :  { %3166 = vmatprep.subr.mxu0 %v3428_v9 }
 0xcf9   :  { %v1291_v36 = vpop.f32.mrf.mxu1 }
 0xcfa   :  { %v1292_v37 = vadd.f32 %v3640_v61, %v1291_v36 }
 0xcfb   :  { %v3121_v38 = vpop.f32.mrf.mxu1 }
 0xcfc   :  { %1303 = vrot.lane.b32.xlu1 %v1292_v37, %s3430_s19 }
 0xd52   :  { %v1219_v39 = vpop.f32.mrf.mxu0 }
 0xd53   :  { %v1220_v40 = vadd.f32 %v3670_v2, %v1219_v39 }
 0xd54   :  { %v3110_v41 = vpop.f32.mrf.mxu0 }
 0xd55   :  { %v1295_v42 = vadd.f32 %v1292_v37, %v1220_v40 }
 0xd57   :  { %v2798_v44 = vmul.f32 -1.442695, %v1295_v42 }
 0xd59   :  { %3327 = vpow2.f32 %v2798_v44 }
 0xd5a   :  { %v1396_v46 = vpop.f32.mrf.mxu0 }
 0xd5b   :  { %v1397_v53 = vadd.f32 %v3543_v26, %v1396_v46 }
 0xd5c   :  { %v3132_v54 = vpop.f32.mrf.mxu0 }
 0xd5d   :  { %1408 = vrot.lane.b32.xlu0 %v1397_v53, %s3430_s19  ;;  %v1400_v62 = vadd.f32 %v1397_v53, %v1329_v60 }
 0xd5f   :  { %v2800_v63 = vmul.f32 -1.442695, %v1400_v62 }
 0xd66   :  { %v3328_v55 = vpop.eup %3327 }
 0xd67   :  { %v1299_v56 = vadd.f32 1.0, %v3328_v55 }
 0xd69   :  { %3329 = vrcp.f32 %v1299_v56 }
 0xd6a   :  { %3331 = vpow2.f32 %v2800_v63 }
 0xd6e   :  { %v1304_v58 = vpop.permute.xlu1 %1303 }
 0xd76   :  { %v3330_v57 = vpop.eup %3329 }
 0xd77   :  { %v1306_v59 = vmul.f32 %v3330_v57, %v1304_v58  ;;  %v3332_v0 = vpop.eup %3331 }
 0xd78   :  { %v1404_v1 = vadd.f32 1.0, %v3332_v0 }
 0xd79   :  { %1308 = vrot.lane.b32.xlu1 %v1306_v59, %s3430_s19 }
 0xd7a   :  { %3333 = vrcp.f32 %v1404_v1 }
 0xd87   :  { %v3334_v3 = vpop.eup %3333 }
 0xdcf   :  { %v1409_v4 = vpop.permute.xlu0 %1408 }
 0xdd0   :  { %v1411_v5 = vmul.f32 %v3334_v3, %v1409_v4 }
 0xdd2   :  { %1413 = vrot.lane.b32.xlu0 %v1411_v5, %s3430_s19 }
 0xdeb   :  { %v1309_v6 = vpop.permute.xlu1 %1308 }
 0xdec   :  { %v1311_v7 = vadd.f32 %v1309_v6, %v1220_v40  ;;  %v1610_v40 = vld [vmem:[#allocation2 + $0x28] sm:$0xff] }
 0xdee   :  { %3335 = vtanh.f32 %v1311_v7 }
 0xdfb   :  { %v3336_v11 = vpop.eup %3335 }
 0xdfc   :  { %v1313_v14 = vsub.f32 %v3792_v31, %v3336_v11 }
 0xdfe   :  { %1315 = vrot.lane.b32.xlu1 %v1313_v14, %s3431_s20 }
 0xe44   :  { %v1414_v15 = vpop.permute.xlu0 %1413 }
 0xe45   :  { %v1416_v16 = vadd.f32 %v1414_v15, %v1329_v60 }
 0xe47   :  { %3337 = vtanh.f32 %v1416_v16  ;;  %v3957_v16 = vld [vmem:[%s4200_s1 + $0x70] sm:$0xff] }
 0xe54   :  { %v3338_v17 = vpop.eup %3337 }
 0xe55   :  { %v1418_v18 = vsub.f32 %v3796_v33, %v3338_v17 }
 0xe57   :  { %1420 = vrot.lane.b32.xlu0 %v1418_v18, %s3431_s20 }
 0xe70   :  { %v1316_v19 = vpop.permute.xlu1 %1315 }
 0xe71   :  { %v1318_v20 = vmul.f32 %v3330_v57, %v1316_v19 }
 0xe73   :  { %1320 = vrot.lane.b32.xlu1 %v1318_v20, %s3432_s14 }
 0xec9   :  { %v1421_v21 = vpop.permute.xlu0 %1420 }
 0xeca   :  { %v1423_v22 = vmul.f32 %v3334_v3, %v1421_v21 }
 0xecc   :  { %1425 = vrot.lane.b32.xlu0 %v1423_v22, %s3432_s14 }
 0xee5   :  { %v1321_v23 = vpop.permute.xlu1 %1320 }
 0xee6   :  { %v3847_v24 = vadd.f32 %v3336_v11, %v1321_v23 }
 0xee8   :  { %1325 = vrot.lane.b32.xlu1 %v3847_v24, %s3430_s19 }
 0xf3e   :  { %v1426_v25 = vpop.permute.xlu0 %1425 }
 0xf3f   :  { %v3851_v27 = vadd.f32 %v3338_v17, %v1426_v25  ;;  %v3966_v17 = vld [vmem:[%s4200_s1 + $0x68] sm:$0xff] }
 0xf41   :  { %1430 = vrot.lane.b32.xlu0 %v3851_v27, %s3430_s19 }
 0xf5a   :  { %v1326_v28 = vpop.permute.xlu1 %1325 }
 0xf5b   :  { %1328 = vst.msk [vmem:[#allocation3 + $0x18] sm:$0xff] %vm196_vm3, %v1326_v28  ;;  %3153 = vmatmul.mubr.msk.f32.vlgmr.msra.gmra.mxu0 %vm196_vm3, %v1326_v28 }
 0xf5c   :  { %3167 = vmatpush3.msra.mxu0 %v3580_v48  ;;  %3174 = vmatprep.mubr.msk.f32.mxu0 %vm3429_vm1, %v3428_v9 }
 0xf5d   :  { %3168 = vmatprep.subr.mxu0 %v3428_v9 }
 0xf5e   :  { %3169 = vmatpush3.msra.mxu0 %v3588_v49 }
 0xf5f   :  { %3170 = vmatprep.subr.mxu0 %v3428_v9 }
 0xf60   :  { %3171 = vmatpush3.msra.mxu0 %v3602_v51 }
 0xf61   :  { %3172 = vmatprep.subr.mxu0 %v3428_v9 }
 0xf62   :  { %3173 = vmatpush3.msra.mxu0 %v3611_v52 }
 0xf63   :  { %3188 = vmatprep.subr.mxu0 %v3428_v9 }
 0xfb3   :  { %v1431_v29 = vpop.permute.xlu0 %1430 }
 0xfb4   :  { %3142 = vmatmul.mubr.msk.f32.vlgmr.msra.gmra.mxu1 %vm196_vm3, %v1431_v29 }
 0xfb5   :  { %3156 = vmatpush3.msra.mxu1 %v3487_v8  ;;  %3163 = vmatprep.mubr.msk.f32.mxu1 %vm3429_vm1, %v3428_v9 }
 0xfb6   :  { %3157 = vmatprep.subr.mxu1 %v3428_v9 }
 0xfb7   :  { %3158 = vmatpush3.msra.mxu1 %v3496_v10 }
 0xfb8   :  { %3159 = vmatprep.subr.mxu1 %v3428_v9 }
 0xfb9   :  { %3160 = vmatpush3.msra.mxu1 %v3507_v12 }
 0xfba   :  { %3161 = vmatprep.subr.mxu1 %v3428_v9 }
 0xfbb   :  { %3162 = vmatpush3.msra.mxu1 %v3515_v13 }
 0xfbc   :  { %3164 = vmatmul.mubr.msk.f32.vlgmr.msra.gmra.mxu1 %vm196_vm3, %v1431_v29  ;;  %3177 = vmatprep.subr.mxu1 %v3428_v9 }
 0xfbd   :  { %3178 = vmatpush3.msra.mxu1 %v3555_v43  ;;  %3185 = vmatprep.mubr.msk.f32.mxu1 %vm3429_vm1, %v3428_v9 }
 0xfbe   :  { %3179 = vmatprep.subr.mxu1 %v3428_v9 }
 0xfbf   :  { %3180 = vmatpush3.msra.mxu1 %v3563_v45 }
 0xfc0   :  { %3181 = vmatprep.subr.mxu1 %v3428_v9 }
 0xfc1   :  { %3182 = vmatpush3.msra.mxu1 %v3575_v47 }
 0xfc2   :  { %3183 = vmatprep.subr.mxu1 %v3428_v9 }
 0xfc3   :  { %3184 = vmatpush3.msra.mxu1 %v3594_v50 }
 0xfc4   :  { %3199 = vmatprep.subr.mxu1 %v3428_v9 }
0x101b   :  { %v1572_v8 = vpop.f32.mrf.mxu0 }
0x101c   :  { %v1573_v10 = vadd.f32 %v3640_v61, %v1572_v8 }
0x101d   :  { %v3154_v12 = vpop.f32.mrf.mxu0 }
0x101e   :  { %1584 = vrot.lane.b32.xlu1 %v1573_v10, %s3430_s19  ;;  %v1891_v12 = vld [vmem:[#allocation2 + $0x30] sm:$0xff] }
0x1074   :  { %v1500_v13 = vpop.f32.mrf.mxu1 }
0x1075   :  { %v1501_v43 = vadd.f32 %v3670_v2, %v1500_v13 }
0x1076   :  { %v3143_v45 = vpop.f32.mrf.mxu1 }
0x1077   :  { %v1576_v30 = vadd.f32 %v1573_v10, %v1501_v43 }
0x1079   :  { %v2803_v31 = vmul.f32 -1.442695, %v1576_v30 }
0x107b   :  { %3339 = vpow2.f32 %v2803_v31 }
0x107c   :  { %v1677_v32 = vpop.f32.mrf.mxu1 }
0x107d   :  { %v1678_v33 = vadd.f32 %v3543_v26, %v1677_v32 }
0x107e   :  { %v3165_v34 = vpop.f32.mrf.mxu1 }
0x107f   :  { %1689 = vrot.lane.b32.xlu0 %v1678_v33, %s3430_s19  ;;  %v1681_v41 = vadd.f32 %v1678_v33, %v1610_v40 }
0x1081   :  { %v2805_v42 = vmul.f32 -1.442695, %v1681_v41 }
0x1088   :  { %v3340_v35 = vpop.eup %3339 }
0x1089   :  { %v1580_v36 = vadd.f32 1.0, %v3340_v35 }
0x108b   :  { %3341 = vrcp.f32 %v1580_v36 }
0x108c   :  { %3343 = vpow2.f32 %v2805_v42 }
0x1090   :  { %v1585_v38 = vpop.permute.xlu1 %1584 }
0x1098   :  { %v3342_v37 = vpop.eup %3341 }
0x1099   :  { %v1587_v39 = vmul.f32 %v3342_v37, %v1585_v38  ;;  %v3344_v44 = vpop.eup %3343 }
0x109a   :  { %v1685_v46 = vadd.f32 1.0, %v3344_v44 }
0x109b   :  { %1589 = vrot.lane.b32.xlu1 %v1587_v39, %s3430_s19 }
0x109c   :  { %3345 = vrcp.f32 %v1685_v46 }
0x10a9   :  { %v3346_v53 = vpop.eup %3345 }
0x10f1   :  { %v1690_v26 = vpop.permute.xlu0 %1689 }
0x10f2   :  { %v1692_v54 = vmul.f32 %v3346_v53, %v1690_v26 }
0x10f4   :  { %1694 = vrot.lane.b32.xlu0 %v1692_v54, %s3430_s19 }
0x110d   :  { %v1590_v55 = vpop.permute.xlu1 %1589 }
0x110e   :  { %v1592_v56 = vadd.f32 %v1590_v55, %v1501_v43 }
0x1110   :  { %3347 = vtanh.f32 %v1592_v56 }
0x111d   :  { %v3348_v57 = vpop.eup %3347 }
0x111e   :  { %v1594_v58 = vsub.f32 %v3847_v24, %v3348_v57 }
0x1120   :  { %1596 = vrot.lane.b32.xlu1 %v1594_v58, %s3431_s20  ;;  %v3420_v58 = vld [vmem:[%s4200_s1 + $0x50] sm:$0xff] }
0x1166   :  { %v1695_v59 = vpop.permute.xlu0 %1694 }
0x1167   :  { %v1697_v60 = vadd.f32 %v1695_v59, %v1610_v40  ;;  %v3421_v59 = vld [vmem:[%s4200_s1 + $0x48] sm:$0xff] }
0x1169   :  { %3349 = vtanh.f32 %v1697_v60  ;;  %v3422_v60 = vld [vmem:[%s4200_s1 + $0x40] sm:$0xff] }
0x1176   :  { %v3350_v62 = vpop.eup %3349 }
0x1177   :  { %v1699_v63 = vsub.f32 %v3851_v27, %v3350_v62 }
0x1179   :  { %1701 = vrot.lane.b32.xlu0 %v1699_v63, %s3431_s20 }
0x1192   :  { %v1597_v0 = vpop.permute.xlu1 %1596 }
0x1193   :  { %v1599_v1 = vmul.f32 %v3342_v37, %v1597_v0  ;;  %v3424_v0 = vld [vmem:[%s4200_s1 + $0x60] sm:$0xff] }
0x1195   :  { %1601 = vrot.lane.b32.xlu1 %v1599_v1, %s3432_s14  ;;  %v3425_v1 = vld [vmem:[%s4200_s1 + $0x58] sm:$0xff] }
0x11eb   :  { %v1702_v3 = vpop.permute.xlu0 %1701 }
0x11ec   :  { %v1704_v4 = vmul.f32 %v3346_v53, %v1702_v3 }
0x11ee   :  { %1706 = vrot.lane.b32.xlu0 %v1704_v4, %s3432_s14  ;;  %v4047_v4 = vld [vmem:[%s4202_s2 + $0x3] ss:$0 sm:$0xff] }
0x1207   :  { %v1602_v5 = vpop.permute.xlu1 %1601 }
0x1208   :  { %v3902_v6 = vadd.f32 %v3348_v57, %v1602_v5 }
0x120a   :  { %1606 = vrot.lane.b32.xlu1 %v3902_v6, %s3430_s19 }
0x1260   :  { %v1707_v7 = vpop.permute.xlu0 %1706 }
0x1261   :  { %v3906_v11 = vadd.f32 %v3350_v62, %v1707_v7  ;;  %v3423_v62 = vld [vmem:[%s4200_s1 + $0x38] sm:$0xff] }
0x1263   :  { %1711 = vrot.lane.b32.xlu0 %v3906_v11, %s3430_s19 }
0x127c   :  { %v1607_v14 = vpop.permute.xlu1 %1606 }
0x127d   :  { %1609 = vst.msk [vmem:[#allocation3 + $0x20] sm:$0xff] %vm196_vm3, %v1607_v14  ;;  %3186 = vmatmul.mubr.msk.f32.vlgmr.msra.gmra.mxu1 %vm196_vm3, %v1607_v14 }
0x127e   :  { %3200 = vmatpush3.msra.mxu1 %v3580_v48  ;;  %3207 = vmatprep.mubr.msk.f32.mxu1 %vm3429_vm1, %v3428_v9  ;;  %v3926_v48 = vld [vmem:[%s4200_s1 + $0x30] sm:$0xff] }
0x127f   :  { %3201 = vmatprep.subr.mxu1 %v3428_v9 }
0x1280   :  { %3202 = vmatpush3.msra.mxu1 %v3588_v49  ;;  %v3935_v49 = vld [vmem:[%s4200_s1 + $0x28] sm:$0xff] }
0x1281   :  { %3203 = vmatprep.subr.mxu1 %v3428_v9 }
0x1282   :  { %3204 = vmatpush3.msra.mxu1 %v3602_v51  ;;  %v3942_v51 = vld [vmem:[%s4200_s1 + $0x20] sm:$0xff] }
0x1283   :  { %3205 = vmatprep.subr.mxu1 %v3428_v9 }
0x1284   :  { %3206 = vmatpush3.msra.mxu1 %v3611_v52  ;;  %v3949_v52 = vld [vmem:[%s4200_s1 + $0x18] sm:$0xff] }
0x1285   :  { %3221 = vmatprep.subr.mxu1 %v3428_v9 }
0x12d5   :  { %v1712_v15 = vpop.permute.xlu0 %1711 }
0x12d6   :  { %3175 = vmatmul.mubr.msk.f32.vlgmr.msra.gmra.mxu0 %vm196_vm3, %v1712_v15 }
0x12d7   :  { %3189 = vmatpush3.msra.mxu0 %v3926_v48  ;;  %3196 = vmatprep.mubr.msk.f32.mxu0 %vm3429_vm1, %v3428_v9 }
0x12d8   :  { %3190 = vmatprep.subr.mxu0 %v3428_v9 }
0x12d9   :  { %3191 = vmatpush3.msra.mxu0 %v3935_v49 }
0x12da   :  { %3192 = vmatprep.subr.mxu0 %v3428_v9 }
0x12db   :  { %3193 = vmatpush3.msra.mxu0 %v3942_v51 }
0x12dc   :  { %3194 = vmatprep.subr.mxu0 %v3428_v9 }
0x12dd   :  { %3195 = vmatpush3.msra.mxu0 %v3949_v52 }
0x12de   :  { %3197 = vmatmul.mubr.msk.f32.vlgmr.msra.gmra.mxu0 %vm196_vm3, %v1712_v15  ;;  %3210 = vmatprep.subr.mxu0 %v3428_v9 }
0x12df   :  { %3211 = vmatpush3.msra.mxu0 %v3957_v16  ;;  %3218 = vmatprep.mubr.msk.f32.mxu0 %vm3429_vm1, %v3428_v9 }
0x12e0   :  { %3212 = vmatprep.subr.mxu0 %v3428_v9 }
0x12e1   :  { %3213 = vmatpush3.msra.mxu0 %v3966_v17 }
0x12e2   :  { %3214 = vmatprep.subr.mxu0 %v3428_v9 }
0x12e3   :  { %3215 = vmatpush3.msra.mxu0 %v3575_v47 }
0x12e4   :  { %3216 = vmatprep.subr.mxu0 %v3428_v9 }
0x12e5   :  { %3217 = vmatpush3.msra.mxu0 %v3594_v50  ;;  %v3980_v50 = vld [vmem:[%s4202_s2 + $0x1] ss:$0 sm:$0xff] }
0x12e6   :  { %3232 = vmatprep.subr.mxu0 %v3428_v9 }
0x133d   :  { %v1853_v18 = vpop.f32.mrf.mxu1 }
0x133e   :  { %v1854_v19 = vadd.f32 %v3640_v61, %v1853_v18 }
0x133f   :  { %v3187_v20 = vpop.f32.mrf.mxu1 }
0x1340   :  { %1865 = vrot.lane.b32.xlu1 %v1854_v19, %s3430_s19 }
0x1396   :  { %v1781_v21 = vpop.f32.mrf.mxu0 }
0x1397   :  { %v1782_v22 = vadd.f32 %v3670_v2, %v1781_v21  ;;  %v2172_v21 = vld [vmem:[#allocation2 + $0x38] sm:$0xff] }
0x1398   :  { %v3176_v23 = vpop.f32.mrf.mxu0 }
0x1399   :  { %v1857_v24 = vadd.f32 %v1854_v19, %v1782_v22 }
0x139b   :  { %v2808_v25 = vmul.f32 -1.442695, %v1857_v24 }
0x139d   :  { %3351 = vpow2.f32 %v2808_v25 }
0x139e   :  { %v1958_v47 = vpop.f32.mrf.mxu0 }
0x139f   :  { %v1959_v27 = vadd.f32 %v3980_v50, %v1958_v47 }
0x13a0   :  { %v3198_v28 = vpop.f32.mrf.mxu0 }
0x13a1   :  { %1970 = vrot.lane.b32.xlu0 %v1959_v27, %s3430_s19  ;;  %v1962_v13 = vadd.f32 %v1959_v27, %v1891_v12 }
0x13a3   :  { %v2810_v43 = vmul.f32 -1.442695, %v1962_v13 }
0x13aa   :  { %v3352_v61 = vpop.eup %3351 }
0x13ab   :  { %v1861_v29 = vadd.f32 1.0, %v3352_v61 }
0x13ad   :  { %3353 = vrcp.f32 %v1861_v29 }
0x13ae   :  { %3355 = vpow2.f32 %v2810_v43 }
0x13b2   :  { %v1866_v2 = vpop.permute.xlu1 %1865 }
0x13ba   :  { %v3354_v8 = vpop.eup %3353 }
0x13bb   :  { %v1868_v10 = vmul.f32 %v3354_v8, %v1866_v2  ;;  %v3356_v45 = vpop.eup %3355 }
0x13bc   :  { %v1966_v30 = vadd.f32 1.0, %v3356_v45 }
0x13bd   :  { %1870 = vrot.lane.b32.xlu1 %v1868_v10, %s3430_s19 }
0x13be   :  { %3357 = vrcp.f32 %v1966_v30 }
0x13cb   :  { %v3358_v31 = vpop.eup %3357 }
0x1413   :  { %v1971_v32 = vpop.permute.xlu0 %1970 }
0x1414   :  { %v1973_v33 = vmul.f32 %v3358_v31, %v1971_v32  ;;  %v34_v32 = vld [vmem:[%s4200_s1 + $0x90] sm:$0xff] }
0x1416   :  { %1975 = vrot.lane.b32.xlu0 %v1973_v33, %s3430_s19 }
0x142f   :  { %v1871_v34 = vpop.permute.xlu1 %1870 }
0x1430   :  { %v1873_v35 = vadd.f32 %v1871_v34, %v1782_v22 }
0x1432   :  { %3359 = vtanh.f32 %v1873_v35 }
0x143f   :  { %v3360_v36 = vpop.eup %3359 }
0x1440   :  { %v1875_v37 = vsub.f32 %v3902_v6, %v3360_v36 }
0x1442   :  { %1877 = vrot.lane.b32.xlu1 %v1875_v37, %s3431_s20 }
0x1488   :  { %v1976_v38 = vpop.permute.xlu0 %1975 }
0x1489   :  { %v1978_v39 = vadd.f32 %v1976_v38, %v1891_v12 }
0x148b   :  { %3361 = vtanh.f32 %v1978_v39  ;;  %v33_v39 = vld [vmem:[%s4200_s1 + $0x88] sm:$0xff] }
0x1498   :  { %v3362_v40 = vpop.eup %3361 }
0x1499   :  { %v1980_v41 = vsub.f32 %v3906_v11, %v3362_v40 }
0x149b   :  { %1982 = vrot.lane.b32.xlu0 %v1980_v41, %s3431_s20  ;;  %v32_v41 = vld [vmem:[%s4200_s1 + $0x80] sm:$0xff] }
0x14b4   :  { %v1878_v42 = vpop.permute.xlu1 %1877 }
0x14b5   :  { %v1880_v44 = vmul.f32 %v3354_v8, %v1878_v42  ;;  %v31_v42 = vld [vmem:[%s4200_s1 + $0x78] sm:$0xff] }
0x14b7   :  { %1882 = vrot.lane.b32.xlu1 %v1880_v44, %s3432_s14  ;;  %v2458_v44 = vld [vmem:[#allocation3 + $0x8] sm:$0xff] }
0x150d   :  { %v1983_v46 = vpop.permute.xlu0 %1982 }
0x150e   :  { %v1985_v53 = vmul.f32 %v3358_v31, %v1983_v46  ;;  %v2459_v46 = vld [vmem:[#allocation3 + $0x10] sm:$0xff] }
0x1510   :  { %1987 = vrot.lane.b32.xlu0 %v1985_v53, %s3432_s14  ;;  %v2460_v53 = vld [vmem:[#allocation3 + $0x18] sm:$0xff] }
0x1529   :  { %v1883_v26 = vpop.permute.xlu1 %1882 }
0x152a   :  { %v3992_v54 = vadd.f32 %v3360_v36, %v1883_v26  ;;  %v2461_v26 = vld [vmem:[#allocation3 + $0x20] sm:$0xff] }
0x152c   :  { %1887 = vrot.lane.b32.xlu1 %v3992_v54, %s3430_s19 }
0x1582   :  { %v1988_v55 = vpop.permute.xlu0 %1987 }
0x1583   :  { %v3996_v56 = vadd.f32 %v3362_v40, %v1988_v55  ;;  %v2457_v40 = vld [vmem:[#allocation3] sm:$0xff] }
0x1585   :  { %1992 = vrot.lane.b32.xlu0 %v3996_v56, %s3430_s19 }
0x159e   :  { %v1888_v57 = vpop.permute.xlu1 %1887 }
0x159f   :  { %1890 = vst.msk [vmem:[#allocation3 + $0x28] sm:$0xff] %vm196_vm3, %v1888_v57  ;;  %3219 = vmatmul.mubr.msk.f32.vlgmr.msra.gmra.mxu0 %vm196_vm3, %v1888_v57 }
0x15a0   :  { %3233 = vmatpush3.msra.mxu0 %v3420_v58  ;;  %3240 = vmatprep.mubr.msk.f32.mxu0 %vm3429_vm1, %v3428_v9 }
0x15a1   :  { %3234 = vmatprep.subr.mxu0 %v3428_v9 }
0x15a2   :  { %3235 = vmatpush3.msra.mxu0 %v3421_v59 }
0x15a3   :  { %3236 = vmatprep.subr.mxu0 %v3428_v9 }
0x15a4   :  { %3237 = vmatpush3.msra.mxu0 %v3422_v60  ;;  %v2598_v60 = vlaneseq }
0x15a5   :  { %3238 = vmatprep.subr.mxu0 %v3428_v9 }
0x15a6   :  { %3239 = vmatpush3.msra.mxu0 %v3423_v62 }
0x15a7   :  { %3254 = vmatprep.subr.mxu0 %v34_v32 }
0x15f7   :  { %v1993_v63 = vpop.permute.xlu0 %1992 }
0x15f8   :  { %3208 = vmatmul.mubr.msk.f32.vlgmr.msra.gmra.mxu1 %vm196_vm3, %v1993_v63 }
0x15f9   :  { %3222 = vmatpush3.msra.mxu1 %v3926_v48  ;;  %3229 = vmatprep.mubr.msk.f32.mxu1 %vm3429_vm1, %v3428_v9 }
0x15fa   :  { %3223 = vmatprep.subr.mxu1 %v3428_v9 }
0x15fb   :  { %3224 = vmatpush3.msra.mxu1 %v3935_v49 }
0x15fc   :  { %3225 = vmatprep.subr.mxu1 %v3428_v9 }
0x15fd   :  { %3226 = vmatpush3.msra.mxu1 %v3942_v51 }
0x15fe   :  { %3227 = vmatprep.subr.mxu1 %v3428_v9 }
0x15ff   :  { %3228 = vmatpush3.msra.mxu1 %v3949_v52 }
0x1600   :  { %3230 = vmatmul.mubr.msk.f32.vlgmr.msra.gmra.mxu1 %vm196_vm3, %v1993_v63  ;;  %3243 = vmatprep.subr.mxu1 %v3428_v9 }
0x1601   :  { %3244 = vmatpush3.msra.mxu1 %v3957_v16  ;;  %3251 = vmatprep.mubr.msk.f32.mxu1 %vm3429_vm1, %v3428_v9 }
0x1602   :  { %3245 = vmatprep.subr.mxu1 %v3428_v9 }
0x1603   :  { %3246 = vmatpush3.msra.mxu1 %v3966_v17 }
0x1604   :  { %3247 = vmatprep.subr.mxu1 %v3428_v9 }
0x1605   :  { %3248 = vmatpush3.msra.mxu1 %v3424_v0 }
0x1606   :  { %3249 = vmatprep.subr.mxu1 %v3428_v9  ;;  %v4054_v9 = vld [vmem:[%s4202_s2 + $0x2] ss:$0 sm:$0xff] }
0x1607   :  { %3250 = vmatpush3.msra.mxu1 %v3425_v1  ;;  %v4104_v1 = vshrl.u32 %v2598_v60, 7 }
0x1609   :  { %vm2600_vm4 = vcmp.lt.s32.totalorder %v4104_v1, 4 }
0x165f   :  { %v2134_v3 = vpop.f32.mrf.mxu0 }
0x1660   :  { %v2135_v5 = vadd.f32 %v4047_v4, %v2134_v3 }
0x1661   :  { %v3220_v6 = vpop.f32.mrf.mxu0 }
0x1662   :  { %2146 = vrot.lane.b32.xlu1 %v2135_v5, %s3430_s19 }
0x16b8   :  { %v2062_v7 = vpop.f32.mrf.mxu1 }
0x16b9   :  { %v2063_v11 = vadd.f32 %v4054_v9, %v2062_v7 }
0x16ba   :  { %v3209_v14 = vpop.f32.mrf.mxu1 }
0x16bb   :  { %v2138_v15 = vadd.f32 %v2135_v5, %v2063_v11  ;;  %v4109_v5 = vld [vmem:[%s4202_s2 + $0x4] ss:$0 sm:$0xff] }
0x16bd   :  { %v2813_v48 = vmul.f32 -1.442695, %v2138_v15 }
0x16bf   :  { %3363 = vpow2.f32 %v2813_v48 }
0x16c0   :  { %v2239_v49 = vpop.f32.mrf.mxu1 }
0x16c1   :  { %v2240_v51 = vadd.f32 %v3980_v50, %v2239_v49 }
0x16c2   :  { %v3231_v52 = vpop.f32.mrf.mxu1 }
0x16c3   :  { %2251 = vrot.lane.b32.xlu0 %v2240_v51, %s3430_s19  ;;  %v2243_v22 = vadd.f32 %v2240_v51, %v2172_v21 }
0x16c5   :  { %v2815_v23 = vmul.f32 -1.442695, %v2243_v22 }
0x16cc   :  { %v3364_v16 = vpop.eup %3363 }
0x16cd   :  { %v2142_v17 = vadd.f32 1.0, %v3364_v16 }
0x16cf   :  { %3365 = vrcp.f32 %v2142_v17 }
0x16d0   :  { %3367 = vpow2.f32 %v2815_v23 }
0x16d4   :  { %v2147_v19 = vpop.permute.xlu1 %2146 }
0x16dc   :  { %v3366_v18 = vpop.eup %3365 }
0x16dd   :  { %v2149_v20 = vmul.f32 %v3366_v18, %v2147_v19  ;;  %v3368_v24 = vpop.eup %3367 }
0x16de   :  { %v2247_v25 = vadd.f32 1.0, %v3368_v24 }
0x16df   :  { %2151 = vrot.lane.b32.xlu1 %v2149_v20, %s3430_s19 }
0x16e0   :  { %3369 = vrcp.f32 %v2247_v25 }
0x16ed   :  { %v3370_v47 = vpop.eup %3369 }
0x1735   :  { %v2252_v50 = vpop.permute.xlu0 %2251 }
0x1736   :  { %v2254_v27 = vmul.f32 %v3370_v47, %v2252_v50 }
0x1738   :  { %2256 = vrot.lane.b32.xlu0 %v2254_v27, %s3430_s19 }
0x1751   :  { %v2152_v28 = vpop.permute.xlu1 %2151 }
0x1752   :  { %v2154_v61 = vadd.f32 %v2152_v28, %v2063_v11 }
0x1754   :  { %3371 = vtanh.f32 %v2154_v61 }
0x1761   :  { %v3372_v29 = vpop.eup %3371 }
0x1762   :  { %v2156_v8 = vsub.f32 %v3992_v54, %v3372_v29  ;;  %v2462_v54 = vld [vmem:[#allocation3 + $0x28] sm:$0xff] }
0x1764   :  { %2158 = vrot.lane.b32.xlu1 %v2156_v8, %s3431_s20 }
0x17aa   :  { %v2257_v2 = vpop.permute.xlu0 %2256 }
0x17ab   :  { %v2259_v10 = vadd.f32 %v2257_v2, %v2172_v21 }
0x17ad   :  { %3373 = vtanh.f32 %v2259_v10 }
0x17ba   :  { %v3374_v12 = vpop.eup %3373 }
0x17bb   :  { %v2261_v13 = vsub.f32 %v3996_v56, %v3374_v12 }
0x17bd   :  { %2263 = vrot.lane.b32.xlu0 %v2261_v13, %s3431_s20 }
0x17d6   :  { %v2159_v43 = vpop.permute.xlu1 %2158 }
0x17d7   :  { %v2161_v45 = vmul.f32 %v3366_v18, %v2159_v43 }
0x17d9   :  { %2163 = vrot.lane.b32.xlu1 %v2161_v45, %s3432_s14 }
0x182f   :  { %v2264_v30 = vpop.permute.xlu0 %2263 }
0x1830   :  { %v2266_v31 = vmul.f32 %v3370_v47, %v2264_v30 }
0x1832   :  { %2268 = vrot.lane.b32.xlu0 %v2266_v31, %s3432_s14 }
0x184b   :  { %v2164_v33 = vpop.permute.xlu1 %2163 }
0x184c   :  { %v4070_v34 = vadd.f32 %v3372_v29, %v2164_v33 }
0x184e   :  { %2168 = vrot.lane.b32.xlu1 %v4070_v34, %s3430_s19 }
0x18a4   :  { %v2269_v35 = vpop.permute.xlu0 %2268 }
0x18a5   :  { %v2271_v36 = vadd.f32 %v3374_v12, %v2269_v35 }
0x18a7   :  { %2273 = vrot.lane.b32.xlu0 %v2271_v36, %s3430_s19 }
0x18c0   :  { %v2169_v37 = vpop.permute.xlu1 %2168 }
0x18c1   :  { %2171 = vst.msk [vmem:[#allocation3 + $0x30] sm:$0xff] %vm196_vm3, %v2169_v37  ;;  %3252 = vmatmul.mubr.msk.f32.vlgmr.msra.gmra.mxu1 %vm196_vm3, %v2169_v37 }
0x18c8   :  { %v2463_v55 = vld [vmem:[#allocation3 + $0x30] sm:$0xff] }
0x1919   :  { %v2274_v38 = vpop.permute.xlu0 %2273 }
0x191a   :  { %2454 = vst.msk [vmem:[%s4203_s4] sm:$0xff] %vm196_vm3, %v2274_v38  ;;  %3241 = vmatmul.mubr.msk.f32.vlgmr.msra.gmra.mxu0 %vm196_vm3, %v2274_v38 }
0x191b   :  { %3255 = vmatpush3.msra.mxu0 %v34_v32  ;;  %3262 = vmatprep.mubr.msk.f32.mxu0 %vm196_vm3, %v2457_v40 }
0x191c   :  { %3256 = vmatprep.subr.mxu0 %v33_v39 }
0x191d   :  { %3257 = vmatpush3.msra.mxu0 %v33_v39 }
0x191e   :  { %3258 = vmatprep.subr.mxu0 %v32_v41 }
0x191f   :  { %3259 = vmatpush3.msra.mxu0 %v32_v41 }
0x1920   :  { %3260 = vmatprep.subr.mxu0 %v31_v42 }
0x1921   :  { %3261 = vmatpush3.msra.mxu0 %v31_v42 }
0x1922   :  { %3263 = vmatmul.mubr.msk.f32.vlgmr.msra.gmra.mxu0 %vm196_vm3, %v2458_v44 }
0x1923   :  { %3265 = vmatprep.mubr.msk.f32.mxu0 %vm196_vm3, %v2459_v46 }
0x1926   :  { %3266 = vmatmul.mubr.msk.f32.gmra.mxu0 %vm196_vm3, %v2460_v53 }
0x1927   :  { %3268 = vmatprep.mubr.msk.f32.mxu0 %vm196_vm3, %v2461_v26 }
0x192a   :  { %3269 = vmatmul.mubr.msk.f32.gmra.mxu0 %vm196_vm3, %v2462_v54 }
0x192b   :  { %3271 = vmatprep.mubr.msk.f32.mxu0 %vm196_vm3, %v2463_v55 }
0x1981   :  { %v2415_v56 = vpop.f32.mrf.mxu1 }
0x1982   :  { %v2416_v57 = vadd.f32 %v4047_v4, %v2415_v56 }
0x1983   :  { %v3253_v58 = vpop.f32.mrf.mxu1 }
0x1984   :  { %2427 = vrot.lane.b32.xlu1 %v2416_v57, %s3430_s19 }
0x19da   :  { %v2343_v59 = vpop.f32.mrf.mxu0 }
0x19db   :  { %v4101_v62 = vadd.f32 %v4054_v9, %v2343_v59 }
0x19dc   :  { %v3242_v63 = vpop.f32.mrf.mxu0 }
0x19dd   :  { %v2419_v0 = vadd.f32 %v2416_v57, %v4101_v62 }
0x19df   :  { %v2818_v3 = vmul.f32 -1.442695, %v2419_v0 }
0x19e1   :  { %3375 = vpow2.f32 %v2818_v3 }
0x19e2   :  { %v3264_v4 = vpop.f32.mrf.mxu0 }
0x19e3   :  { %v2565_v6 = vadd.f32 %v3264_v4, %v4109_v5 }
0x19e4   :  { %v2559_v7 = vpop.f32.mrf.mxu0 }
0x19e5   :  { %v2602_v9 = vsel %vm2600_vm4, %v2565_v6, -1e+30  ;;  %v2560_v11 = vadd.f32 %v4109_v5, %v2559_v7 }
0x19e6   :  { %v2615_v14 = vrot.slane %v2602_v9, 4  ;;  %v3267_v15 = vpop.f32.mrf.mxu0 }
0x19e7   :  { %v2601_v48 = vsel %vm2600_vm4, %v2560_v11, -1e+30  ;;  %v2575_v49 = vadd.f32 %v3267_v15, %v4109_v5 }
0x19e8   :  { %v2616_v51 = vmax.f32 %v2602_v9, %v2615_v14  ;;  %v2609_v52 = vrot.slane %v2601_v48, 4  ;;  %v2569_v16 = vpop.f32.mrf.mxu0 }
0x19e9   :  { %v2604_v17 = vsel %vm2600_vm4, %v2575_v49, -1e+30  ;;  %v2570_v18 = vadd.f32 %v4109_v5, %v2569_v16 }
0x19ea   :  { %v2617_v19 = vrot.slane %v2616_v51, 2  ;;  %v2610_v20 = vmax.f32 %v2601_v48, %v2609_v52  ;;  %v2627_v21 = vrot.slane %v2604_v17, 4  ;;  %v3270_v22 = vpop.f32.mrf.mxu0 }
0x19eb   :  { %v2603_v23 = vsel %vm2600_vm4, %v2570_v18, -1e+30  ;;  %v2585_v24 = vadd.f32 %v3270_v22, %v4109_v5 }
0x19ec   :  { %v2618_v25 = vmax.f32 %v2616_v51, %v2617_v19  ;;  %v2611_v47 = vrot.slane %v2610_v20, 2  ;;  %v2628_v50 = vmax.f32 %v2604_v17, %v2627_v21  ;;  %v2621_v27 = vrot.slane %v2603_v23, 4  ;;  %v2579_v28 = vpop.f32.mrf.mxu0 }
0x19ed   :  { %v2606_v61 = vsel %vm2600_vm4, %v2585_v24, -1e+30  ;;  %v2580_v29 = vadd.f32 %v4109_v5, %v2579_v28 }
0x19ee   :  { %v3376_v8 = vpop.eup %3375  ;;  %v2619_v2 = vrot.slane %v2618_v25, 1  ;;  %v2612_v10 = vmax.f32 %v2610_v20, %v2611_v47  ;;  %v2629_v12 = vrot.slane %v2628_v50, 2  ;;  %v2622_v13 = vmax.f32 %v2603_v23, %v2621_v27 }
0x19ef   :  { %v2423_v43 = vadd.f32 1.0, %v3376_v8  ;;  %v2639_v45 = vrot.slane %v2606_v61, 4  ;;  %v2605_v30 = vsel %vm2600_vm4, %v2580_v29, -1e+30 }
0x19f0   :  { %v2620_v31 = vmax.f32 %v2618_v25, %v2619_v2  ;;  %v2613_v32 = vrot.slane %v2612_v10, 1  ;;  %v2630_v33 = vmax.f32 %v2628_v50, %v2629_v12  ;;  %v2623_v35 = vrot.slane %v2622_v13, 2 }
0x19f1   :  { %3377 = vrcp.f32 %v2423_v43  ;;  %v2640_v36 = vmax.f32 %v2606_v61, %v2639_v45  ;;  %v2633_v37 = vrot.slane %v2605_v30, 4 }
0x19f2   :  { %v4130_v38 = vsub.f32 %v2602_v9, %v2620_v31  ;;  %v2614_v39 = vmax.f32 %v2612_v10, %v2613_v32  ;;  %v2631_v40 = vrot.slane %v2630_v33, 1  ;;  %v2624_v41 = vmax.f32 %v2622_v13, %v2623_v35 }
0x19f3   :  { %v2641_v42 = vrot.slane %v2640_v36, 2  ;;  %v2634_v44 = vmax.f32 %v2605_v30, %v2633_v37 }
0x19f4   :  { %v2667_v46 = vmul.f32 1.442695, %v4130_v38  ;;  %v4133_v53 = vsub.f32 %v2601_v48, %v2614_v39  ;;  %v2632_v26 = vmax.f32 %v2630_v33, %v2631_v40  ;;  %v2625_v54 = vrot.slane %v2624_v41, 1 }
0x19f5   :  { %v2642_v55 = vmax.f32 %v2640_v36, %v2641_v42  ;;  %v2635_v56 = vrot.slane %v2634_v44, 2 }
0x19f6   :  { %3379 = vpow2.f32 %v2667_v46  ;;  %v2665_v57 = vmul.f32 1.442695, %v4133_v53  ;;  %v4136_v58 = vsub.f32 %v2604_v17, %v2632_v26  ;;  %v2626_v59 = vmax.f32 %v2624_v41, %v2625_v54  ;;  %v2428_v49 = vpop.permute.xlu1 %2427 }
0x19f7   :  { %v2643_v60 = vrot.slane %v2642_v55, 1  ;;  %v2636_v63 = vmax.f32 %v2634_v44, %v2635_v56 }
0x19f8   :  { %3381 = vpow2.f32 %v2665_v57  ;;  %v2671_v0 = vmul.f32 1.442695, %v4136_v58  ;;  %v4139_v3 = vsub.f32 %v2603_v23, %v2626_v59 }
0x19f9   :  { %v2644_v4 = vmax.f32 %v2642_v55, %v2643_v60  ;;  %v2637_v6 = vrot.slane %v2636_v63, 1 }
0x19fa   :  { %3383 = vpow2.f32 %v2671_v0  ;;  %v2669_v7 = vmul.f32 1.442695, %v4139_v3 }
0x19fb   :  { %v4142_v9 = vsub.f32 %v2606_v61, %v2644_v4  ;;  %v2638_v11 = vmax.f32 %v2636_v63, %v2637_v6 }
0x19fc   :  { %3385 = vpow2.f32 %v2669_v7 }
0x19fd   :  { %v2675_v14 = vmul.f32 1.442695, %v4142_v9  ;;  %v4145_v15 = vsub.f32 %v2605_v30, %v2638_v11 }
0x19fe   :  { %v4147_v48 = vpop.eup %3377 }
0x19ff   :  { %3387 = vpow2.f32 %v2675_v14  ;;  %v2673_v51 = vmul.f32 1.442695, %v4145_v15  ;;  %v2430_v52 = vmul.f32 %v4147_v48, %v2428_v49 }
0x1a01   :  { %3389 = vpow2.f32 %v2673_v51  ;;  %2432 = vrot.lane.b32.xlu0 %v2430_v52, %s3430_s19 }
0x1a03   :  { %v3380_v16 = vpop.eup %3379 }
0x1a04   :  { %v2687_v17 = vrot.slane %v3380_v16, 4 }
0x1a05   :  { %v3382_v18 = vpop.eup %3381 }
0x1a06   :  { %v2688_v19 = vadd.f32 %v3380_v16, %v2687_v17  ;;  %v2681_v20 = vrot.slane %v3382_v18, 4 }
0x1a07   :  { %v3384_v21 = vpop.eup %3383 }
0x1a08   :  { %v2689_v22 = vrot.slane %v2688_v19, 2  ;;  %v2682_v23 = vadd.f32 %v3382_v18, %v2681_v20  ;;  %v2699_v24 = vrot.slane %v3384_v21, 4 }
0x1a09   :  { %v3386_v25 = vpop.eup %3385 }
0x1a0a   :  { %v2690_v47 = vadd.f32 %v2689_v22, %v2688_v19  ;;  %v2683_v50 = vrot.slane %v2682_v23, 2  ;;  %v2700_v27 = vadd.f32 %v3384_v21, %v2699_v24  ;;  %v2693_v28 = vrot.slane %v3386_v25, 4 }
0x1a0c   :  { %v3388_v61 = vpop.eup %3387  ;;  %v2691_v29 = vrot.slane %v2690_v47, 1  ;;  %v2684_v8 = vadd.f32 %v2683_v50, %v2682_v23  ;;  %v2701_v2 = vrot.slane %v2700_v27, 2  ;;  %v2694_v10 = vadd.f32 %v3386_v25, %v2693_v28 }
0x1a0d   :  { %v2711_v12 = vrot.slane %v3388_v61, 4 }
0x1a0e   :  { %v3390_v13 = vpop.eup %3389  ;;  %v2692_v43 = vadd.f32 %v2691_v29, %v2690_v47  ;;  %v2685_v45 = vrot.slane %v2684_v8, 1  ;;  %v2702_v30 = vadd.f32 %v2701_v2, %v2700_v27  ;;  %v2695_v31 = vrot.slane %v2694_v10, 2 }
0x1a0f   :  { %v2712_v32 = vadd.f32 %v3388_v61, %v2711_v12  ;;  %v2705_v33 = vrot.slane %v3390_v13, 4 }
0x1a10   :  { %3391 = vlog2.f32 %v2692_v43  ;;  %v2686_v35 = vadd.f32 %v2685_v45, %v2684_v8  ;;  %v2703_v36 = vrot.slane %v2702_v30, 1  ;;  %v2696_v37 = vadd.f32 %v2695_v31, %v2694_v10 }
0x1a11   :  { %v2713_v39 = vrot.slane %v2712_v32, 2  ;;  %v2706_v40 = vadd.f32 %v3390_v13, %v2705_v33 }
0x1a12   :  { %3393 = vlog2.f32 %v2686_v35  ;;  %v2704_v41 = vadd.f32 %v2703_v36, %v2702_v30  ;;  %v2697_v42 = vrot.slane %v2696_v37, 1 }
0x1a13   :  { %v2714_v44 = vadd.f32 %v2713_v39, %v2712_v32  ;;  %v2707_v46 = vrot.slane %v2706_v40, 2 }
0x1a14   :  { %3395 = vlog2.f32 %v2704_v41  ;;  %v2698_v26 = vadd.f32 %v2697_v42, %v2696_v37 }
0x1a15   :  { %v2715_v54 = vrot.slane %v2714_v44, 1  ;;  %v2708_v55 = vadd.f32 %v2707_v46, %v2706_v40 }
0x1a16   :  { %3397 = vlog2.f32 %v2698_v26 }
0x1a17   :  { %v2716_v56 = vadd.f32 %v2715_v54, %v2714_v44  ;;  %v2709_v57 = vrot.slane %v2708_v55, 1 }
0x1a19   :  { %3399 = vlog2.f32 %v2716_v56  ;;  %v2710_v59 = vadd.f32 %v2709_v57, %v2708_v55 }
0x1a1b   :  { %3401 = vlog2.f32 %v2710_v59 }
0x1a1d   :  { %v3392_v60 = vpop.eup %3391 }
0x1a1e   :  { %v2732_v63 = vmul.f32 0.6931472, %v3392_v60 }
0x1a1f   :  { %v3394_v0 = vpop.eup %3393 }
0x1a20   :  { %v2746_v4 = vsub.f32 %v4130_v38, %v2732_v63  ;;  %v2730_v6 = vmul.f32 0.6931472, %v3394_v0 }
0x1a21   :  { %v3396_v7 = vpop.eup %3395 }
0x1a22   :  { %2754 = vst [vmem:[%s4204_s3 + $0x8] sm:$0xff] %v2746_v4  ;;  %v2745_v11 = vsub.f32 %v4133_v53, %v2730_v6  ;;  %v2736_v14 = vmul.f32 0.6931472, %v3396_v7 }
0x1a23   :  { %v3398_v49 = vpop.eup %3397 }
0x1a24   :  { %2753 = vst [vmem:[%s4204_s3] sm:$0xff] %v2745_v11  ;;  %v2748_v51 = vsub.f32 %v4136_v58, %v2736_v14  ;;  %v2734_v52 = vmul.f32 0.6931472, %v3398_v49 }
0x1a26   :  { %v3400_v16 = vpop.eup %3399  ;;  %2756 = vst [vmem:[%s4204_s3 + $0x18] sm:$0xff] %v2748_v51  ;;  %v2747_v38 = vsub.f32 %v4139_v3, %v2734_v52 }
0x1a27   :  { %v2740_v17 = vmul.f32 0.6931472, %v3400_v16 }
0x1a28   :  { %v3402_v18 = vpop.eup %3401  ;;  %2755 = vst [vmem:[%s4204_s3 + $0x10] sm:$0xff] %v2747_v38 }
0x1a29   :  { %v2750_v53 = vsub.f32 %v4142_v9, %v2740_v17  ;;  %v2738_v19 = vmul.f32 0.6931472, %v3402_v18 }
0x1a2b   :  { %2758 = vst [vmem:[%s4204_s3 + $0x28] sm:$0xff] %v2750_v53  ;;  %v2749_v58 = vsub.f32 %v4145_v15, %v2738_v19 }
0x1a2d   :  { %2757 = vst [vmem:[%s4204_s3 + $0x20] sm:$0xff] %v2749_v58 }
0x1a73   :  { %v2433_v3 = vpop.permute.xlu0 %2432 }
0x1a74   :  { %v2435_v20 = vadd.f32 %v2433_v3, %v4101_v62 }
0x1a76   :  { %3403 = vtanh.f32 %v2435_v20 }
0x1a83   :  { %v3404_v21 = vpop.eup %3403 }
0x1a84   :  { %v2437_v22 = vsub.f32 %v4070_v34, %v3404_v21 }
0x1a86   :  { %2439 = vrot.lane.b32.xlu1 %v2437_v22, %s3431_s20 }
0x1af8   :  { %v2440_v9 = vpop.permute.xlu1 %2439 }
0x1af9   :  { %v2442_v23 = vmul.f32 %v4147_v48, %v2440_v9 }
0x1afb   :  { %2444 = vrot.lane.b32.xlu0 %v2442_v23, %s3432_s14 }
0x1b6d   :  { %v2445_v24 = vpop.permute.xlu0 %2444 }
0x1b6e   :  { %v2447_v15 = vadd.f32 %v3404_v21, %v2445_v24 }
0x1b70   :  { %2449 = vrot.lane.b32.xlu1 %v2447_v15, %s3430_s19 }
0x1be2   :  { %v2450_v25 = vpop.permute.xlu1 %2449 }
0x1be3   :  { %2452 = vst.msk [vmem:[#allocation3 + $0x38] sm:$0xff] %vm196_vm3, %v2450_v25  ;;  %2819 = vst.msk [vmem:[%s4203_s4 + $0x8] sm:$0xff] %vm196_vm3, %v2450_v25 }
0x1bea   :  { %v2464_v34 = vld [vmem:[#allocation3 + $0x38] sm:$0xff] }
0x1beb   :  { %3272 = vmatmul.mubr.msk.f32.gmra.mxu0 %vm196_vm3, %v2464_v34 }
0x1cab   :  { %v3273_v62 = vpop.f32.mrf.mxu0 }
0x1cac   :  { %v2595_v48 = vadd.f32 %v3273_v62, %v4109_v5 }
0x1cad   :  { %v2589_v47 = vpop.f32.mrf.mxu0 }
0x1cae   :  { %v2608_v50 = vsel %vm2600_vm4, %v2595_v48, -1e+30  ;;  %v2590_v27 = vadd.f32 %v4109_v5, %v2589_v47 }
0x1caf   :  { %v2651_v28 = vrot.slane %v2608_v50, 4 }
0x1cb0   :  { %v2607_v61 = vsel %vm2600_vm4, %v2590_v27, -1e+30 }
0x1cb1   :  { %v2652_v29 = vmax.f32 %v2608_v50, %v2651_v28  ;;  %v2645_v8 = vrot.slane %v2607_v61, 4 }
0x1cb3   :  { %v2653_v2 = vrot.slane %v2652_v29, 2  ;;  %v2646_v10 = vmax.f32 %v2607_v61, %v2645_v8 }
0x1cb5   :  { %v2654_v12 = vmax.f32 %v2652_v29, %v2653_v2  ;;  %v2647_v13 = vrot.slane %v2646_v10, 2 }
0x1cb7   :  { %v2655_v43 = vrot.slane %v2654_v12, 1  ;;  %v2648_v45 = vmax.f32 %v2646_v10, %v2647_v13 }
0x1cb9   :  { %v2656_v30 = vmax.f32 %v2654_v12, %v2655_v43  ;;  %v2649_v31 = vrot.slane %v2648_v45, 1 }
0x1cbb   :  { %v2664_v32 = vsub.f32 %v2608_v50, %v2656_v30  ;;  %v2650_v33 = vmax.f32 %v2648_v45, %v2649_v31 }
0x1cbd   :  { %v2679_v35 = vmul.f32 1.442695, %v2664_v32  ;;  %v2663_v36 = vsub.f32 %v2607_v61, %v2650_v33 }
0x1cbf   :  { %3405 = vpow2.f32 %v2679_v35  ;;  %v2677_v5 = vmul.f32 1.442695, %v2663_v36 }
0x1cc1   :  { %3407 = vpow2.f32 %v2677_v5 }
0x1ccc   :  { %v3406_v37 = vpop.eup %3405 }
0x1ccd   :  { %v2723_v1 = vrot.slane %v3406_v37, 4 }
0x1cce   :  { %v3408_v39 = vpop.eup %3407 }
0x1ccf   :  { %v2724_v40 = vadd.f32 %v3406_v37, %v2723_v1  ;;  %v2717_v41 = vrot.slane %v3408_v39, 4 }
0x1cd1   :  { %v2725_v42 = vrot.slane %v2724_v40, 2  ;;  %v2718_v44 = vadd.f32 %v3408_v39, %v2717_v41 }
0x1cd3   :  { %v2726_v46 = vadd.f32 %v2725_v42, %v2724_v40  ;;  %v2719_v26 = vrot.slane %v2718_v44, 2 }
0x1cd5   :  { %v2727_v54 = vrot.slane %v2726_v46, 1  ;;  %v2720_v55 = vadd.f32 %v2719_v26, %v2718_v44 }
0x1cd7   :  { %v2728_v56 = vadd.f32 %v2727_v54, %v2726_v46  ;;  %v2721_v57 = vrot.slane %v2720_v55, 1 }
0x1cd9   :  { %3409 = vlog2.f32 %v2728_v56  ;;  %v2722_v59 = vadd.f32 %v2721_v57, %v2720_v55 }
0x1cdb   :  { %3411 = vlog2.f32 %v2722_v59 }
0x1ce6   :  { %v3410_v60 = vpop.eup %3409 }
0x1ce7   :  { %v2744_v63 = vmul.f32 0.6931472, %v3410_v60 }
0x1ce8   :  { %v3412_v0 = vpop.eup %3411 }
0x1ce9   :  { %v2752_v4 = vsub.f32 %v2664_v32, %v2744_v63  ;;  %v2742_v6 = vmul.f32 0.6931472, %v3412_v0 }
0x1ceb   :  { %2760 = vst [vmem:[%s4204_s3 + $0x38] sm:$0xff] %v2752_v4  ;;  %v2751_v7 = vsub.f32 %v2663_v36, %v2742_v6 }
0x1ced   :  { %2759 = vst [vmem:[%s4204_s3 + $0x30] sm:$0xff] %v2751_v7 }

</bundles_post_ra>
